<compile_context>
chip_gen: v7x
topology: tpu7x:2x2x1
jax: 0.10.0
libtpu: 0.0.40
codegen_flags: <defaults>
</compile_context>

<pallas_src>
import functools

import jax
import jax.numpy as jnp
from jax.experimental import pallas as pl
from jax.experimental.pallas import tpu as pltpu


def _make_decoder_kernel(th, w, cin, cmid, ncp):
    """Builds the fused kernel for a (th x w) output row slab."""

    def kernel(x_ref, w1_ref, bias_ref, w2_ref, b2_ref, o_ref):
        # x_ref:    (th+2, w+2, cin)  bf16  halo'd NHWC input slab
        # w1_ref:   (9, cin, cmid)    bf16  3x3 weights (BN scale folded), tap-major
        # bias_ref: (1, cmid)         f32   folded BN bias
        # w2_ref:   (cmid, ncp)       bf16  1x1 weights, padded to 128 output lanes
        # b2_ref:   (1, ncp)          f32   1x1 bias, padded
        # o_ref:    (th, w, ncp)      f32   output slab (lane-dense)
        m = th * w
        acc = jnp.zeros((m, cmid), jnp.float32)
        for ky in range(3):
            for kx in range(3):
                tap = x_ref[ky:ky + th, kx:kx + w, :].reshape(m, cin)
                acc += jnp.dot(tap, w1_ref[ky * 3 + kx],
                               preferred_element_type=jnp.float32)
        y = jnp.maximum(acc + bias_ref[...], 0.0).astype(jnp.bfloat16)
        out = jnp.dot(y, w2_ref[...], preferred_element_type=jnp.float32)
        out = out + b2_ref[...]
        o_ref[...] = out.reshape(th, w, ncp).astype(o_ref.dtype)

    return kernel


def _pick_row_slab(b, h, w, max_rows=2048):
    """Largest divisor of h with th*w <= max_rows rows per step; ensure >=2 grid steps."""
    th = 1
    for d in range(h, 0, -1):
        if h % d == 0 and d * w <= max_rows:
            th = d
            break
    if b * (h // th) < 2:          # give both v7x TensorCores a grid step
        for d in range(h // 2, 0, -1):
            if h % d == 0:
                th = d
                break
    return th


@functools.partial(jax.jit, static_argnames=("eps",))
def decoder_forward(x_nchw, params, *, eps=1e-5):
    """x_nchw: (B, 256, H, W) float32.  Returns (B, num_classes, H, W) float32."""
    w1, gamma, beta, run_mean, run_var, w2, b2 = (
        params["w1"], params["gamma"], params["beta"],
        params["run_mean"], params["run_var"], params["w2"], params["b2"],
    )
    B, Cin, H, W = x_nchw.shape
    Cmid = w1.shape[0]
    NC = w2.shape[0]
    assert w1.shape[1] == Cin and w1.shape[2:] == (3, 3)
    assert Cin % 128 == 0 and Cmid % 128 == 0, "channels must be lane-aligned"
    assert NC <= 128, "num_classes must fit a single 128-lane register"

    NCp = 128                                  # lane-dense padded output channels
    TH = _pick_row_slab(B, H, W)
    nrb = H // TH

    # ---------------- trace-time prep (fused by XLA under jit) ----------------
    # NCHW -> NHWC, zero-pad spatial for "same" conv, cast heavy operand to bf16.
    x_nhwc = jnp.transpose(x_nchw, (0, 2, 3, 1)).astype(jnp.bfloat16)
    x_pad = jnp.pad(x_nhwc, ((0, 0), (1, 1), (1, 1), (0, 0)))   # (B, H+2, W+2, Cin)
    if nrb == 1:
        slabs = x_pad[:, None]                                  # (B, 1, H+2, W+2, Cin)
    else:
        # Overlapping halo'd row slabs: ~(TH+2)/TH input replication, << 9x im2col.
        slabs = jnp.stack(
            [x_pad[:, r * TH:r * TH + TH + 2] for r in range(nrb)], axis=1)

    # Fold BatchNorm (eval) into conv1: scale into the weights, bias kept apart.
    scale = gamma / jnp.sqrt(run_var + eps)                     # (Cmid,)
    bias = (beta - run_mean * scale).reshape(1, Cmid).astype(jnp.float32)
    # (Cmid, Cin, 3, 3) -> (3, 3, Cin, Cmid) -> (9, Cin, Cmid), tap-major (ky, kx).
    w1_taps = (jnp.transpose(w1, (2, 3, 1, 0)).reshape(9, Cin, Cmid)
               * scale[None, None, :]).astype(jnp.bfloat16)

    # 1x1 conv: (NC, Cmid, 1, 1) -> (Cmid, NCp) with zero-padded output lanes.
    w2_mat = jnp.transpose(w2.reshape(NC, Cmid), (1, 0))        # (Cmid, NC)
    w2_pad = jnp.pad(w2_mat, ((0, 0), (0, NCp - NC))).astype(jnp.bfloat16)
    b2_pad = jnp.pad(b2.reshape(1, NC), ((0, 0), (0, NCp - NC))).astype(jnp.float32)

    kernel = _make_decoder_kernel(TH, W, Cin, Cmid, NCp)

    # VMEM budget: double-buffered input/output blocks + resident weights + acc slack.
    slab_bytes = (TH + 2) * (W + 2) * Cin * 2
    out_bytes = TH * W * NCp * 4
    wgt_bytes = 9 * Cin * Cmid * 2 + Cmid * NCp * 2 + (Cmid + NCp) * 4
    acc_bytes = TH * W * Cmid * 4
    vmem_need = 2 * (slab_bytes + out_bytes + wgt_bytes) + 3 * acc_bytes + (4 << 20)
    vmem_limit = int(min(max(vmem_need, 32 << 20), 56 << 20))

    flops = 2 * B * H * W * (9 * Cin * Cmid + Cmid * NCp)
    bytes_accessed = B * nrb * slab_bytes + wgt_bytes + B * H * W * NCp * 4

    out = pl.pallas_call(
        kernel,
        out_shape=jax.ShapeDtypeStruct((B, nrb, TH, W, NCp), jnp.float32),
        grid_spec=pltpu.PrefetchScalarGridSpec(
            num_scalar_prefetch=0,
            grid=(B, nrb),
            in_specs=[
                # Halo'd input slab for this (batch, row-slab) step.
                pl.BlockSpec((None, None, TH + 2, W + 2, Cin),
                             lambda b, r: (b, r, 0, 0, 0)),
                # Grid-invariant weights/biases: constant index_maps keep them
                # VMEM-resident (no re-DMA when the block index doesn't change).
                pl.BlockSpec((9, Cin, Cmid), lambda b, r: (0, 0, 0)),
                pl.BlockSpec((1, Cmid), lambda b, r: (0, 0)),
                pl.BlockSpec((Cmid, NCp), lambda b, r: (0, 0)),
                pl.BlockSpec((1, NCp), lambda b, r: (0, 0)),
            ],
            out_specs=pl.BlockSpec((None, None, TH, W, NCp),
                                   lambda b, r: (b, r, 0, 0, 0)),
        ),
        compiler_params=pltpu.CompilerParams(
            dimension_semantics=("parallel", "parallel"),
            vmem_limit_bytes=vmem_limit),
        cost_estimate=pl.CostEstimate(
            flops=flops, transcendentals=0, bytes_accessed=bytes_accessed),
    )(slabs, w1_taps, bias, w2_pad, b2_pad)

    # Drop channel padding, back to NCHW (fused with the kernel epilogue under jit).
    out = out.reshape(B, H, W, NCp)[..., :NC]
    return jnp.transpose(out, (0, 3, 1, 2))


def decoder_reference(x_nchw, params, *, eps=1e-5):
    """Pure-JAX reference (NCHW, mirrors the PyTorch forward in eval mode)."""
    w1, gamma, beta, run_mean, run_var, w2, b2 = (
        params["w1"], params["gamma"], params["beta"],
        params["run_mean"], params["run_var"], params["w2"], params["b2"],
    )
    y = jax.lax.conv_general_dilated(
        x_nchw, w1, window_strides=(1, 1), padding=((1, 1), (1, 1)),
        dimension_numbers=("NCHW", "OIHW", "NCHW"))
    scale = (gamma / jnp.sqrt(run_var + eps)).reshape(1, -1, 1, 1)
    bias = (beta - run_mean * gamma / jnp.sqrt(run_var + eps)).reshape(1, -1, 1, 1)
    y = jnp.maximum(y * scale + bias, 0.0)
    y = jax.lax.conv_general_dilated(
        y, w2, window_strides=(1, 1), padding=((0, 0), (0, 0)),
        dimension_numbers=("NCHW", "OIHW", "NCHW"))
    return y + b2.reshape(1, -1, 1, 1)


def make_params(key, cin=256, cmid=256, num_classes=4):
    ks = jax.random.split(key, 6)
    w1 = jax.random.normal(ks[0], (cmid, cin, 3, 3), jnp.float32) * 0.02
    gamma = 1.0 + 0.1 * jax.random.normal(ks[1], (cmid,), jnp.float32)
    beta = 0.1 * jax.random.normal(ks[2], (cmid,), jnp.float32)
    run_mean = 0.05 * jax.random.normal(ks[3], (cmid,), jnp.float32)
    run_var = jnp.abs(jax.random.normal(ks[4], (cmid,), jnp.float32)) * 0.1 + 1.0
    w2 = jax.random.normal(ks[5], (num_classes, cmid, 1, 1), jnp.float32) * 0.05
    b2 = jnp.linspace(-0.1, 0.1, num_classes).astype(jnp.float32)
    return {"w1": w1, "gamma": gamma, "beta": beta, "run_mean": run_mean,
            "run_var": run_var, "w2": w2, "b2": b2}


if __name__ == "__main__":
    # Small shapes consistent with the module: Cin is fixed at 256 by the module.
    B, Cin, H, W = 2, 256, 8, 8
    NUM_CLASSES = 4

    key = jax.random.PRNGKey(0)
    kx, kp = jax.random.split(key)
    x = jax.random.normal(kx, (B, Cin, H, W), jnp.float32)
    params = make_params(kp, cin=Cin, cmid=256, num_classes=NUM_CLASSES)

    out = jax.block_until_ready(decoder_forward(x, params))
    ref = jax.block_until_ready(decoder_reference(x, params))

    assert out.shape == (B, NUM_CLASSES, H, W), out.shape
    # bf16 operands / f32 accumulation on both matmuls: bf16-appropriate tolerance.
    assert jnp.allclose(out, ref, rtol=1e-2, atol=1e-2), float(
        jnp.max(jnp.abs(out - ref)))
    print("KERNEL_OK")
</pallas_src>

<mosaic_0001>
module attributes {stable_mosaic.version = 11 : i64} {
  func.func @kernel(%arg0: i32, %arg1: i32, %arg2: memref<1x1x10x10x256xbf16, #tpu.memory_space<vmem>>, %arg3: memref<9x256x256xbf16, #tpu.memory_space<vmem>>, %arg4: memref<1x256xf32, #tpu.memory_space<vmem>>, %arg5: memref<256x128xbf16, #tpu.memory_space<vmem>>, %arg6: memref<1x128xf32, #tpu.memory_space<vmem>>, %arg7: memref<1x1x8x8x128xf32, #tpu.memory_space<vmem>>) attributes {dimension_semantics = [#tpu.dimension_semantics<parallel>, #tpu.dimension_semantics<parallel>], iteration_bounds = array<i64: 2, 1>, scalar_prefetch = 0 : i64, scratch_operands = 0 : i64, tpu.core_type = #tpu.core_type<tc>, window_params = [{transform_indices = @transform_0, window_bounds = array<i64: 1, 1, 10, 10, 256>}, {pipeline_mode = #tpu.pipeline_mode<synchronous>, transform_indices = @transform_1, window_bounds = array<i64: 9, 256, 256>}, {pipeline_mode = #tpu.pipeline_mode<synchronous>, transform_indices = @transform_2, window_bounds = array<i64: 1, 256>}, {pipeline_mode = #tpu.pipeline_mode<synchronous>, transform_indices = @transform_3, window_bounds = array<i64: 256, 128>}, {pipeline_mode = #tpu.pipeline_mode<synchronous>, transform_indices = @transform_4, window_bounds = array<i64: 1, 128>}, {transform_indices = @transform_5, window_bounds = array<i64: 1, 1, 8, 8, 128>}]} {
    %cst = arith.constant 0.000000e+00 : f32
    %0 = vector.broadcast %cst : f32 to vector<64x256xf32>
    %c0 = arith.constant 0 : index
    %c0_0 = arith.constant 0 : index
    %c0_1 = arith.constant 0 : index
    %c0_2 = arith.constant 0 : index
    %c0_3 = arith.constant 0 : index
    %1 = vector.load %arg2[%c0, %c0_0, %c0_1, %c0_2, %c0_3] : memref<1x1x10x10x256xbf16, #tpu.memory_space<vmem>>, vector<1x1x8x8x256xbf16>
    %2 = vector.shape_cast %1 : vector<1x1x8x8x256xbf16> to vector<8x8x256xbf16>
    %3 = vector.shape_cast %2 : vector<8x8x256xbf16> to vector<64x256xbf16>
    %c0_4 = arith.constant 0 : index
    %c0_5 = arith.constant 0 : index
    %c0_6 = arith.constant 0 : index
    %4 = vector.load %arg3[%c0_4, %c0_5, %c0_6] : memref<9x256x256xbf16, #tpu.memory_space<vmem>>, vector<1x256x256xbf16>
    %5 = vector.shape_cast %4 : vector<1x256x256xbf16> to vector<256x256xbf16>
    %cst_7 = arith.constant dense<0.000000e+00> : vector<64x256xf32>
    %6 = tpu.matmul %3, %5, %cst_7 {dimension_numbers = #tpu.dot_dimension_numbers<[1], [0], [0], [1], [0, 0, 1, 1], [], []>} : vector<64x256xbf16>, vector<256x256xbf16>, vector<64x256xf32> -> vector<64x256xf32>
    %7 = arith.addf %0, %6 : vector<64x256xf32>
    %c0_8 = arith.constant 0 : index
    %c0_9 = arith.constant 0 : index
    %c0_10 = arith.constant 0 : index
    %c1 = arith.constant 1 : index
    %c0_11 = arith.constant 0 : index
    %8 = vector.load %arg2[%c0_8, %c0_9, %c0_10, %c1, %c0_11] : memref<1x1x10x10x256xbf16, #tpu.memory_space<vmem>>, vector<1x1x8x8x256xbf16>
    %9 = vector.shape_cast %8 : vector<1x1x8x8x256xbf16> to vector<8x8x256xbf16>
    %10 = vector.shape_cast %9 : vector<8x8x256xbf16> to vector<64x256xbf16>
    %c1_12 = arith.constant 1 : index
    %c0_13 = arith.constant 0 : index
    %c0_14 = arith.constant 0 : index
    %11 = vector.load %arg3[%c1_12, %c0_13, %c0_14] : memref<9x256x256xbf16, #tpu.memory_space<vmem>>, vector<1x256x256xbf16>
    %12 = vector.shape_cast %11 : vector<1x256x256xbf16> to vector<256x256xbf16>
    %cst_15 = arith.constant dense<0.000000e+00> : vector<64x256xf32>
    %13 = tpu.matmul %10, %12, %cst_15 {dimension_numbers = #tpu.dot_dimension_numbers<[1], [0], [0], [1], [0, 0, 1, 1], [], []>} : vector<64x256xbf16>, vector<256x256xbf16>, vector<64x256xf32> -> vector<64x256xf32>
    %14 = arith.addf %7, %13 : vector<64x256xf32>
    %c0_16 = arith.constant 0 : index
    %c0_17 = arith.constant 0 : index
    %c0_18 = arith.constant 0 : index
    %c2 = arith.constant 2 : index
    %c0_19 = arith.constant 0 : index
    %15 = vector.load %arg2[%c0_16, %c0_17, %c0_18, %c2, %c0_19] : memref<1x1x10x10x256xbf16, #tpu.memory_space<vmem>>, vector<1x1x8x8x256xbf16>
    %16 = vector.shape_cast %15 : vector<1x1x8x8x256xbf16> to vector<8x8x256xbf16>
    %17 = vector.shape_cast %16 : vector<8x8x256xbf16> to vector<64x256xbf16>
    %c2_20 = arith.constant 2 : index
    %c0_21 = arith.constant 0 : index
    %c0_22 = arith.constant 0 : index
    %18 = vector.load %arg3[%c2_20, %c0_21, %c0_22] : memref<9x256x256xbf16, #tpu.memory_space<vmem>>, vector<1x256x256xbf16>
    %19 = vector.shape_cast %18 : vector<1x256x256xbf16> to vector<256x256xbf16>
    %cst_23 = arith.constant dense<0.000000e+00> : vector<64x256xf32>
    %20 = tpu.matmul %17, %19, %cst_23 {dimension_numbers = #tpu.dot_dimension_numbers<[1], [0], [0], [1], [0, 0, 1, 1], [], []>} : vector<64x256xbf16>, vector<256x256xbf16>, vector<64x256xf32> -> vector<64x256xf32>
    %21 = arith.addf %14, %20 : vector<64x256xf32>
    %c0_24 = arith.constant 0 : index
    %c0_25 = arith.constant 0 : index
    %c1_26 = arith.constant 1 : index
    %c0_27 = arith.constant 0 : index
    %c0_28 = arith.constant 0 : index
    %22 = vector.load %arg2[%c0_24, %c0_25, %c1_26, %c0_27, %c0_28] : memref<1x1x10x10x256xbf16, #tpu.memory_space<vmem>>, vector<1x1x8x8x256xbf16>
    %23 = vector.shape_cast %22 : vector<1x1x8x8x256xbf16> to vector<8x8x256xbf16>
    %24 = vector.shape_cast %23 : vector<8x8x256xbf16> to vector<64x256xbf16>
    %c3 = arith.constant 3 : index
    %c0_29 = arith.constant 0 : index
    %c0_30 = arith.constant 0 : index
    %25 = vector.load %arg3[%c3, %c0_29, %c0_30] : memref<9x256x256xbf16, #tpu.memory_space<vmem>>, vector<1x256x256xbf16>
    %26 = vector.shape_cast %25 : vector<1x256x256xbf16> to vector<256x256xbf16>
    %cst_31 = arith.constant dense<0.000000e+00> : vector<64x256xf32>
    %27 = tpu.matmul %24, %26, %cst_31 {dimension_numbers = #tpu.dot_dimension_numbers<[1], [0], [0], [1], [0, 0, 1, 1], [], []>} : vector<64x256xbf16>, vector<256x256xbf16>, vector<64x256xf32> -> vector<64x256xf32>
    %28 = arith.addf %21, %27 : vector<64x256xf32>
    %c0_32 = arith.constant 0 : index
    %c0_33 = arith.constant 0 : index
    %c1_34 = arith.constant 1 : index
    %c1_35 = arith.constant 1 : index
    %c0_36 = arith.constant 0 : index
    %29 = vector.load %arg2[%c0_32, %c0_33, %c1_34, %c1_35, %c0_36] : memref<1x1x10x10x256xbf16, #tpu.memory_space<vmem>>, vector<1x1x8x8x256xbf16>
    %30 = vector.shape_cast %29 : vector<1x1x8x8x256xbf16> to vector<8x8x256xbf16>
    %31 = vector.shape_cast %30 : vector<8x8x256xbf16> to vector<64x256xbf16>
    %c4 = arith.constant 4 : index
    %c0_37 = arith.constant 0 : index
    %c0_38 = arith.constant 0 : index
    %32 = vector.load %arg3[%c4, %c0_37, %c0_38] : memref<9x256x256xbf16, #tpu.memory_space<vmem>>, vector<1x256x256xbf16>
    %33 = vector.shape_cast %32 : vector<1x256x256xbf16> to vector<256x256xbf16>
    %cst_39 = arith.constant dense<0.000000e+00> : vector<64x256xf32>
    %34 = tpu.matmul %31, %33, %cst_39 {dimension_numbers = #tpu.dot_dimension_numbers<[1], [0], [0], [1], [0, 0, 1, 1], [], []>} : vector<64x256xbf16>, vector<256x256xbf16>, vector<64x256xf32> -> vector<64x256xf32>
    %35 = arith.addf %28, %34 : vector<64x256xf32>
    %c0_40 = arith.constant 0 : index
    %c0_41 = arith.constant 0 : index
    %c1_42 = arith.constant 1 : index
    %c2_43 = arith.constant 2 : index
    %c0_44 = arith.constant 0 : index
    %36 = vector.load %arg2[%c0_40, %c0_41, %c1_42, %c2_43, %c0_44] : memref<1x1x10x10x256xbf16, #tpu.memory_space<vmem>>, vector<1x1x8x8x256xbf16>
    %37 = vector.shape_cast %36 : vector<1x1x8x8x256xbf16> to vector<8x8x256xbf16>
    %38 = vector.shape_cast %37 : vector<8x8x256xbf16> to vector<64x256xbf16>
    %c5 = arith.constant 5 : index
    %c0_45 = arith.constant 0 : index
    %c0_46 = arith.constant 0 : index
    %39 = vector.load %arg3[%c5, %c0_45, %c0_46] : memref<9x256x256xbf16, #tpu.memory_space<vmem>>, vector<1x256x256xbf16>
    %40 = vector.shape_cast %39 : vector<1x256x256xbf16> to vector<256x256xbf16>
    %cst_47 = arith.constant dense<0.000000e+00> : vector<64x256xf32>
    %41 = tpu.matmul %38, %40, %cst_47 {dimension_numbers = #tpu.dot_dimension_numbers<[1], [0], [0], [1], [0, 0, 1, 1], [], []>} : vector<64x256xbf16>, vector<256x256xbf16>, vector<64x256xf32> -> vector<64x256xf32>
    %42 = arith.addf %35, %41 : vector<64x256xf32>
    %c0_48 = arith.constant 0 : index
    %c0_49 = arith.constant 0 : index
    %c2_50 = arith.constant 2 : index
    %c0_51 = arith.constant 0 : index
    %c0_52 = arith.constant 0 : index
    %43 = vector.load %arg2[%c0_48, %c0_49, %c2_50, %c0_51, %c0_52] : memref<1x1x10x10x256xbf16, #tpu.memory_space<vmem>>, vector<1x1x8x8x256xbf16>
    %44 = vector.shape_cast %43 : vector<1x1x8x8x256xbf16> to vector<8x8x256xbf16>
    %45 = vector.shape_cast %44 : vector<8x8x256xbf16> to vector<64x256xbf16>
    %c6 = arith.constant 6 : index
    %c0_53 = arith.constant 0 : index
    %c0_54 = arith.constant 0 : index
    %46 = vector.load %arg3[%c6, %c0_53, %c0_54] : memref<9x256x256xbf16, #tpu.memory_space<vmem>>, vector<1x256x256xbf16>
    %47 = vector.shape_cast %46 : vector<1x256x256xbf16> to vector<256x256xbf16>
    %cst_55 = arith.constant dense<0.000000e+00> : vector<64x256xf32>
    %48 = tpu.matmul %45, %47, %cst_55 {dimension_numbers = #tpu.dot_dimension_numbers<[1], [0], [0], [1], [0, 0, 1, 1], [], []>} : vector<64x256xbf16>, vector<256x256xbf16>, vector<64x256xf32> -> vector<64x256xf32>
    %49 = arith.addf %42, %48 : vector<64x256xf32>
    %c0_56 = arith.constant 0 : index
    %c0_57 = arith.constant 0 : index
    %c2_58 = arith.constant 2 : index
    %c1_59 = arith.constant 1 : index
    %c0_60 = arith.constant 0 : index
    %50 = vector.load %arg2[%c0_56, %c0_57, %c2_58, %c1_59, %c0_60] : memref<1x1x10x10x256xbf16, #tpu.memory_space<vmem>>, vector<1x1x8x8x256xbf16>
    %51 = vector.shape_cast %50 : vector<1x1x8x8x256xbf16> to vector<8x8x256xbf16>
    %52 = vector.shape_cast %51 : vector<8x8x256xbf16> to vector<64x256xbf16>
    %c7 = arith.constant 7 : index
    %c0_61 = arith.constant 0 : index
    %c0_62 = arith.constant 0 : index
    %53 = vector.load %arg3[%c7, %c0_61, %c0_62] : memref<9x256x256xbf16, #tpu.memory_space<vmem>>, vector<1x256x256xbf16>
    %54 = vector.shape_cast %53 : vector<1x256x256xbf16> to vector<256x256xbf16>
    %cst_63 = arith.constant dense<0.000000e+00> : vector<64x256xf32>
    %55 = tpu.matmul %52, %54, %cst_63 {dimension_numbers = #tpu.dot_dimension_numbers<[1], [0], [0], [1], [0, 0, 1, 1], [], []>} : vector<64x256xbf16>, vector<256x256xbf16>, vector<64x256xf32> -> vector<64x256xf32>
    %56 = arith.addf %49, %55 : vector<64x256xf32>
    %c0_64 = arith.constant 0 : index
    %c0_65 = arith.constant 0 : index
    %c2_66 = arith.constant 2 : index
    %c2_67 = arith.constant 2 : index
    %c0_68 = arith.constant 0 : index
    %57 = vector.load %arg2[%c0_64, %c0_65, %c2_66, %c2_67, %c0_68] : memref<1x1x10x10x256xbf16, #tpu.memory_space<vmem>>, vector<1x1x8x8x256xbf16>
    %58 = vector.shape_cast %57 : vector<1x1x8x8x256xbf16> to vector<8x8x256xbf16>
    %59 = vector.shape_cast %58 : vector<8x8x256xbf16> to vector<64x256xbf16>
    %c8 = arith.constant 8 : index
    %c0_69 = arith.constant 0 : index
    %c0_70 = arith.constant 0 : index
    %60 = vector.load %arg3[%c8, %c0_69, %c0_70] : memref<9x256x256xbf16, #tpu.memory_space<vmem>>, vector<1x256x256xbf16>
    %61 = vector.shape_cast %60 : vector<1x256x256xbf16> to vector<256x256xbf16>
    %cst_71 = arith.constant dense<0.000000e+00> : vector<64x256xf32>
    %62 = tpu.matmul %59, %61, %cst_71 {dimension_numbers = #tpu.dot_dimension_numbers<[1], [0], [0], [1], [0, 0, 1, 1], [], []>} : vector<64x256xbf16>, vector<256x256xbf16>, vector<64x256xf32> -> vector<64x256xf32>
    %63 = arith.addf %56, %62 : vector<64x256xf32>
    %c0_72 = arith.constant 0 : index
    %c0_73 = arith.constant 0 : index
    %64 = vector.load %arg4[%c0_72, %c0_73] : memref<1x256xf32, #tpu.memory_space<vmem>>, vector<1x256xf32>
    %65 = vector.broadcast %64 : vector<1x256xf32> to vector<64x256xf32>
    %66 = arith.addf %63, %65 : vector<64x256xf32>
    %cst_74 = arith.constant 0.000000e+00 : f32
    %67 = vector.broadcast %cst_74 : f32 to vector<64x256xf32>
    %68 = arith.maximumf %66, %67 : vector<64x256xf32>
    %69 = arith.truncf %68 : vector<64x256xf32> to vector<64x256xbf16>
    %c0_75 = arith.constant 0 : index
    %c0_76 = arith.constant 0 : index
    %70 = vector.load %arg5[%c0_75, %c0_76] : memref<256x128xbf16, #tpu.memory_space<vmem>>, vector<256x128xbf16>
    %cst_77 = arith.constant dense<0.000000e+00> : vector<64x128xf32>
    %71 = tpu.matmul %69, %70, %cst_77 {dimension_numbers = #tpu.dot_dimension_numbers<[1], [0], [0], [1], [0, 0, 1, 1], [], []>} : vector<64x256xbf16>, vector<256x128xbf16>, vector<64x128xf32> -> vector<64x128xf32>
    %c0_78 = arith.constant 0 : index
    %c0_79 = arith.constant 0 : index
    %72 = vector.load %arg6[%c0_78, %c0_79] : memref<1x128xf32, #tpu.memory_space<vmem>>, vector<1x128xf32>
    %73 = vector.broadcast %72 : vector<1x128xf32> to vector<64x128xf32>
    %74 = arith.addf %71, %73 : vector<64x128xf32>
    %75 = vector.shape_cast %74 : vector<64x128xf32> to vector<8x8x128xf32>
    %c0_80 = arith.constant 0 : index
    %c0_81 = arith.constant 0 : index
    %c0_82 = arith.constant 0 : index
    %c0_83 = arith.constant 0 : index
    %c0_84 = arith.constant 0 : index
    %76 = vector.load %arg7[%c0_80, %c0_81, %c0_82, %c0_83, %c0_84] : memref<1x1x8x8x128xf32, #tpu.memory_space<vmem>>, vector<1x1x8x8x128xf32>
    %77 = vector.shape_cast %76 : vector<1x1x8x8x128xf32> to vector<8x8x128xf32>
    %78 = vector.shape_cast %75 : vector<8x8x128xf32> to vector<1x1x8x8x128xf32>
    tpu.vector_store %arg7[%c0_80, %c0_81, %c0_82, %c0_83, %c0_84], %78 {strides = array<i32>} : memref<1x1x8x8x128xf32, #tpu.memory_space<vmem>>, vector<1x1x8x8x128xf32>,
    return
  }
  func.func @transform_0(%arg0: i32, %arg1: i32) -> (i32, i32, i32, i32, i32) {
    %c0_i32 = arith.constant 0 : i32
    %c0_i32_0 = arith.constant 0 : i32
    %c0_i32_1 = arith.constant 0 : i32
    %c0_i32_2 = arith.constant 0 : i32
    return %arg0, %arg1, %c0_i32, %c0_i32_0, %c0_i32_1 : i32, i32, i32, i32, i32
  }
  func.func @transform_1(%arg0: i32, %arg1: i32) -> (i32, i32, i32) {
    %c0_i32 = arith.constant 0 : i32
    %c0_i32_0 = arith.constant 0 : i32
    %c0_i32_1 = arith.constant 0 : i32
    %c0_i32_2 = arith.constant 0 : i32
    return %c0_i32, %c0_i32_0, %c0_i32_1 : i32, i32, i32
  }
  func.func @transform_2(%arg0: i32, %arg1: i32) -> (i32, i32) {
    %c0_i32 = arith.constant 0 : i32
    %c0_i32_0 = arith.constant 0 : i32
    %c0_i32_1 = arith.constant 0 : i32
    return %c0_i32, %c0_i32_0 : i32, i32
  }
  func.func @transform_3(%arg0: i32, %arg1: i32) -> (i32, i32) {
    %c0_i32 = arith.constant 0 : i32
    %c0_i32_0 = arith.constant 0 : i32
    %c0_i32_1 = arith.constant 0 : i32
    return %c0_i32, %c0_i32_0 : i32, i32
  }
  func.func @transform_4(%arg0: i32, %arg1: i32) -> (i32, i32) {
    %c0_i32 = arith.constant 0 : i32
    %c0_i32_0 = arith.constant 0 : i32
    %c0_i32_1 = arith.constant 0 : i32
    return %c0_i32, %c0_i32_0 : i32, i32
  }
  func.func @transform_5(%arg0: i32, %arg1: i32) -> (i32, i32, i32, i32, i32) {
    %c0_i32 = arith.constant 0 : i32
    %c0_i32_0 = arith.constant 0 : i32
    %c0_i32_1 = arith.constant 0 : i32
    %c0_i32_2 = arith.constant 0 : i32
    return %arg0, %arg1, %c0_i32, %c0_i32_0, %c0_i32_1 : i32, i32, i32, i32, i32
  }
}

</mosaic_0001>

<bundles_post_ra>
// kernel: decoder_forward.1
= control target key start
LH: loop header
LB: loop body
LE: loop exit
PB: predicated region body
PF: predicated region fallthrough
CT: control target
= control target key end

     0   :  { %s5463_s18 = smov 0   ;;  %s5465_s19 = smov 0   ;;  %s6971_s0 = inlined_call_operand.vmem [shape: bf16[2,1,10,10,256], index: 0, kind: input, shape index: {}]   ;;  %s6972_s1 = inlined_call_operand.vmem [shape: bf16[9,256,256], index: 1, kind: input, shape index: {}]   ;;  %s6973_s2 = inlined_call_operand.vmem [shape: f32[1,256], index: 2, kind: input, shape index: {}]   ;;  %s6974_s3 = inlined_call_operand.vmem [shape: bf16[256,128], index: 3, kind: input, shape index: {}]   ;;  %s6975_s4 = inlined_call_operand.vmem [shape: f32[1,128], index: 4, kind: input, shape index: {}]   ;;  %s6976_s5 = inlined_call_operand.vmem [shape: f32[2,1,8,8,128], index: 5, kind: output, shape index: {}]  }
   0x1   :  { %s5467_s20 = smov 0  }
   0x2 LB: > { %s27_s21 = sadd.s32 1, %s5427_s19  ;;  %p4011_p0 = scmp.ge.s32.totalorder %s5431_s20, 1  ;;  %s5431_s20 = sphi %s5467_s20, %s15_s20   ;;  %s5427_s19 = sphi %s5465_s19, %s6982_s19   ;;  %s5423_s18 = sphi %s5463_s18, %s6981_s18  }
   0x3   : > { %p29_p1 = scmp.ge.s32.totalorder %s27_s21, 2  ;;  %p207_p2 = scmp.lt.s32.totalorder %s5431_s20, 3 }
   0x5   : > { %s6984_s21 = smov (%p29_p1, %s27_s21), 0  ;;  %p208_p3 = pnand %p4011_p0, %p207_p2 }
   0x6   : > { %v4932_v0 = vld [vmem:[%s6972_s1 + $0x104] ss:$8 sps:$4 sm:$0xff] (!%p208_p3)   ;;  %v4936_v2 = vld [vmem:[%s6972_s1 + $0x100] ss:$8 sps:$4 sm:$0xff] (!%p208_p3)   ;;  %v4938_v4 = vld [vmem:[%s6972_s1 + $0x114] ss:$8 sps:$4 sm:$0xff] (!%p208_p3)  }
   0x7   : > { %211 = sbr.rel (%p208_p3) target bundleno = 796 (0x31c), region = 40  ;;  %v4934_v1 = vld [vmem:[%s6972_s1 + $0x404] ss:$8 sps:$4 sm:$0xff] (!%p208_p3)   ;;  %650 = vmatprep.subr.bf16.mxu1 (!%p208_p3), %v4932_v0  ;;  %v4937_v3 = vld [vmem:[%s6972_s1 + $0x400] ss:$8 sps:$4 sm:$0xff] (!%p208_p3)   ;;  %p243_p4 = scmp.lt.s32.totalorder (!%p208_p3), %s5423_s18, 1 }
   0x8   : > { %2053 = vmatprep.subr.bf16.mxu0 (!%p208_p3), %v4934_v1  ;;  %651 = vmatpush1.bf16.msra.mxu1 (!%p208_p3), %v4936_v2  ;;  %v4940_v5 = vld [vmem:[%s6972_s1 + $0x414] ss:$8 sps:$4 sm:$0xff] (!%p208_p3)   ;;  %v4942_v6 = vld [vmem:[%s6972_s1 + $0x110] ss:$8 sps:$4 sm:$0xff] (!%p208_p3)   ;;  %v4944_v8 = vld [vmem:[%s6972_s1 + $0x124] ss:$8 sps:$4 sm:$0xff] (!%p208_p3)  }
   0x9   : > { %2054 = vmatpush1.bf16.msra.mxu0 (!%p208_p3), %v4937_v3  ;;  %652 = vmatprep.subr.bf16.mxu1 (!%p208_p3), %v4938_v4  ;;  %v4943_v7 = vld [vmem:[%s6972_s1 + $0x410] ss:$8 sps:$4 sm:$0xff] (!%p208_p3)   ;;  %v4946_v9 = vld [vmem:[%s6972_s1 + $0x424] ss:$8 sps:$4 sm:$0xff] (!%p208_p3)   ;;  %v4948_v10 = vld [vmem:[%s6972_s1 + $0x120] ss:$8 sps:$4 sm:$0xff] (!%p208_p3)  }
   0xa   : > { %2055 = vmatprep.subr.bf16.mxu0 (!%p208_p3), %v4940_v5  ;;  %v4949_v11 = vld [vmem:[%s6972_s1 + $0x420] ss:$8 sps:$4 sm:$0xff] (!%p208_p3)   ;;  %v4950_v12 = vld [vmem:[%s6972_s1 + $0x134] ss:$8 sps:$4 sm:$0xff] (!%p208_p3)   ;;  %v4954_v14 = vld [vmem:[%s6972_s1 + $0x130] ss:$8 sps:$4 sm:$0xff] (!%p208_p3)  }
   0xb   : > { %v4952_v13 = vld [vmem:[%s6972_s1 + $0x434] ss:$8 sps:$4 sm:$0xff] (!%p208_p3)   ;;  %v4955_v15 = vld [vmem:[%s6972_s1 + $0x430] ss:$8 sps:$4 sm:$0xff] (!%p208_p3)   ;;  %v4956_v16 = vld [vmem:[%s6972_s1 + $0x144] ss:$8 sps:$4 sm:$0xff] (!%p208_p3)  }
   0xc   : > { %653 = vmatpush1.bf16.msra.mxu1 (!%p208_p3), %v4942_v6  ;;  %v4958_v17 = vld [vmem:[%s6972_s1 + $0x444] ss:$8 sps:$4 sm:$0xff] (!%p208_p3)   ;;  %v4960_v18 = vld [vmem:[%s6972_s1 + $0x140] ss:$8 sps:$4 sm:$0xff] (!%p208_p3)   ;;  %v4962_v20 = vld [vmem:[%s6972_s1 + $0x154] ss:$8 sps:$4 sm:$0xff] (!%p208_p3)  }
   0xd   : > { %2056 = vmatpush1.bf16.msra.mxu0 (!%p208_p3), %v4943_v7  ;;  %654 = vmatprep.subr.bf16.mxu1 (!%p208_p3), %v4944_v8  ;;  %v4961_v19 = vld [vmem:[%s6972_s1 + $0x440] ss:$8 sps:$4 sm:$0xff] (!%p208_p3)   ;;  %v4964_v21 = vld [vmem:[%s6972_s1 + $0x454] ss:$8 sps:$4 sm:$0xff] (!%p208_p3)   ;;  %v4966_v22 = vld [vmem:[%s6972_s1 + $0x150] ss:$8 sps:$4 sm:$0xff] (!%p208_p3)  }
   0xe   : > { %2057 = vmatprep.subr.bf16.mxu0 %v4946_v9  ;;  %v4967_v23 = vld [vmem:[%s6972_s1 + $0x450] ss:$8 sps:$4 sm:$0xff]   ;;  %v4968_v24 = vld [vmem:[%s6972_s1 + $0x164] ss:$8 sps:$4 sm:$0xff]   ;;  %v4972_v26 = vld [vmem:[%s6972_s1 + $0x160] ss:$8 sps:$4 sm:$0xff]  }
   0xf   : > { %v4970_v25 = vld [vmem:[%s6972_s1 + $0x464] ss:$8 sps:$4 sm:$0xff]   ;;  %v4973_v27 = vld [vmem:[%s6972_s1 + $0x460] ss:$8 sps:$4 sm:$0xff]   ;;  %v4974_v28 = vld [vmem:[%s6972_s1 + $0x174] ss:$8 sps:$4 sm:$0xff]  }
  0x10   : > { %655 = vmatpush1.bf16.msra.mxu1 %v4948_v10  ;;  %v4976_v29 = vld [vmem:[%s6972_s1 + $0x474] ss:$8 sps:$4 sm:$0xff]   ;;  %v4978_v30 = vld [vmem:[%s6972_s1 + $0x170] ss:$8 sps:$4 sm:$0xff]   ;;  %v4980_v32 = vld [vmem:[%s6972_s1 + $0x184] ss:$8 sps:$4 sm:$0xff]  }
  0x11   : > { %2058 = vmatpush1.bf16.msra.mxu0 %v4949_v11  ;;  %656 = vmatprep.subr.bf16.mxu1 %v4950_v12  ;;  %v4979_v31 = vld [vmem:[%s6972_s1 + $0x470] ss:$8 sps:$4 sm:$0xff]   ;;  %v4982_v33 = vld [vmem:[%s6972_s1 + $0x484] ss:$8 sps:$4 sm:$0xff]   ;;  %v4984_v34 = vld [vmem:[%s6972_s1 + $0x180] ss:$8 sps:$4 sm:$0xff]  }
  0x12   : > { %2059 = vmatprep.subr.bf16.mxu0 %v4952_v13  ;;  %v4985_v35 = vld [vmem:[%s6972_s1 + $0x480] ss:$8 sps:$4 sm:$0xff]   ;;  %s6986_s18 = smov (!%p243_p4, %s5423_s18), 1  ;;  %v4986_v36 = vld [vmem:[%s6972_s1 + $0x194] ss:$8 sps:$4 sm:$0xff]   ;;  %vm1020_vm3 = vcmask 1042432  }
  0x13   : > { %v4988_v37 = vld [vmem:[%s6972_s1 + $0x494] ss:$8 sps:$4 sm:$0xff]   ;;  %v4990_v38 = vld [vmem:[%s6972_s1 + $0x190] ss:$8 sps:$4 sm:$0xff]   ;;  %s4907_s12 = smul.u32 160, %s6986_s18  ;;  %vm1021_vm4 = vcmask 1046532  }
  0x14   : > { %657 = vmatpush1.bf16.msra.mxu1 %v4954_v14  ;;  %v4991_v39 = vld [vmem:[%s6972_s1 + $0x490] ss:$8 sps:$4 sm:$0xff]   ;;  %v4992_v40 = vld [vmem:[%s6972_s1 + $0x1a4] ss:$8 sps:$4 sm:$0xff]   ;;  %v4996_v42 = vld [vmem:[%s6972_s1 + $0x1a0] ss:$8 sps:$4 sm:$0xff]  }
  0x15   : > { %2060 = vmatpush1.bf16.msra.mxu0 %v4955_v15  ;;  %658 = vmatprep.subr.bf16.mxu1 %v4956_v16  ;;  %v4994_v41 = vld [vmem:[%s6972_s1 + $0x4a4] ss:$8 sps:$4 sm:$0xff]   ;;  %v4997_v43 = vld [vmem:[%s6972_s1 + $0x4a0] ss:$8 sps:$4 sm:$0xff]   ;;  %s5623_s29 = scalar_lea.vmem %s6971_s0, %s4907_s12  ;;  %v4998_v44 = vld [vmem:[%s6972_s1 + $0x1b4] ss:$8 sps:$4 sm:$0xff]  }
  0x16   : > { %2061 = vmatprep.subr.bf16.mxu0 %v4958_v17  ;;  %vm310_vm0 = vsmask.f32 3328  ;;  %v5000_v45 = vld [vmem:[%s6972_s1 + $0x4b4] ss:$8 sps:$4 sm:$0xff]   ;;  %vm311_vm1 = vsmask.f32 7440  ;;  %vm5953_vm5 = vmor %vm1020_vm3, %vm1021_vm4 }
  0x17   : > { %v5002_v46 = vld [vmem:[%s6972_s1 + $0x1b0] ss:$8 sps:$4 sm:$0xff]   ;;  %v5638_v48 = vld [vmem:[%s5623_s29] sm:$0xff]  ;;  %v302_v50 = vld [vmem:[%s5623_s29 + $0x8] sm:$0x11]  ;;  %s4738_s24 = sshll.u32 %s6986_s18, 6 }
  0x18   : > { %659 = vmatpush1.bf16.msra.mxu1 %v4960_v18  ;;  %v5003_v47 = vld [vmem:[%s6972_s1 + $0x4b0] ss:$8 sps:$4 sm:$0xff]   ;;  %v314_v52 = vshrl.u32 %v5638_v48, 16  ;;  %v317_v53 = vshll.u32 %v5638_v48, 16  ;;  %v323_v54 = vshll.u32 %v302_v50, 16  ;;  %v5662_v4 = vld [vmem:[%s5623_s29 + $0x20] sm:$0xff]  ;;  %vm5684_vm2 = vmor %vm310_vm0, %vm311_vm1  ;;  %s6952_s28 = scalar_lea.vmem %s6976_s5, %s4738_s24 }
  0x19   : > { %2062 = vmatpush1.bf16.msra.mxu0 %v4961_v19  ;;  %660 = vmatprep.subr.bf16.mxu1 %v4962_v20  ;;  %v5641_v49 = vld [vmem:[%s5623_s29 + $0x10] sm:$0xff]  ;;  %v303_v51 = vld [vmem:[%s5623_s29 + $0x18] sm:$0x11]  ;;  %v5004_v57 = vld [vmem:[%s6972_s1 + $0x1c4] ss:$8 sps:$4 sm:$0xff]   ;;  %v1731_v12 = vshrl.u32 %v5662_v4, 16 }
  0x1a   : > { %2063 = vmatprep.subr.bf16.mxu0 %v4964_v21  ;;  %v328_v55 = vshrl.u32 %v5641_v49, 16  ;;  %v331_v56 = vshll.u32 %v5641_v49, 16  ;;  %v5006_v58 = vld [vmem:[%s6972_s1 + $0x4c4] ss:$8 sps:$4 sm:$0xff]   ;;  %v316_v59 = vrot.slane %v314_v52, 4  ;;  %v337_v60 = vshll.u32 %v303_v51, 16 }
  0x1b   : > { %v5008_v61 = vld [vmem:[%s6972_s1 + $0x1c0] ss:$8 sps:$4 sm:$0xff]   ;;  %v319_v62 = vrot.slane %v317_v53, 5  ;;  %v325_v63 = vrot.slane %v323_v54, 5  ;;  %v5659_v3 = vld [vmem:[%s5623_s29 + $0x18] sm:$0x11]  ;;  %v4088_v6 = vcombine.high %v5638_v48, %v5641_v49  ;;  %v4087_v7 = vcombine.low %v5638_v48, %v5641_v49 }
  0x1c   : > { %661 = vmatpush1.bf16.msra.mxu1 %v4966_v22  ;;  %v330_v0 = vrot.slane %v328_v55, 4  ;;  %v333_v1 = vrot.slane %v331_v56, 5  ;;  %v339_v2 = vrot.slane %v337_v60, 5  ;;  %v5665_v5 = vld [vmem:[%s5623_s29 + $0x28] sm:$0x11]  ;;  %v1726_v11 = vshll.u32 %v5659_v3, 16 }
  0x1d   : > { %2064 = vmatpush1.bf16.msra.mxu0 %v4967_v23  ;;  %662 = vmatprep.subr.bf16.mxu1 %v4968_v24  ;;  %v5009_v8 = vld [vmem:[%s6972_s1 + $0x4c0] ss:$8 sps:$4 sm:$0xff]   ;;  %v320_v9 = vor.u32 %v319_v62, %v316_v59  ;;  %v5010_v13 = vld [vmem:[%s6972_s1 + $0x1d4] ss:$8 sps:$4 sm:$0xff]   ;;  %v1734_v16 = vshll.u32 %v5662_v4, 16  ;;  %v1740_v17 = vshll.u32 %v5665_v5, 16 }
  0x1e   : > { %2065 = vmatprep.subr.bf16.mxu0 %v4970_v25  ;;  %v334_v10 = vor.u32 %v333_v1, %v330_v0  ;;  %v5012_v14 = vld [vmem:[%s6972_s1 + $0x4d4] ss:$8 sps:$4 sm:$0xff]   ;;  %v1733_v20 = vrot.slane %v1731_v12, 4  ;;  %v5014_v21 = vld [vmem:[%s6972_s1 + $0x1d0] ss:$8 sps:$4 sm:$0xff]   ;;  %v1728_v23 = vrot.slane %v1726_v11, 5 }
  0x1f   : > { %v321_v18 = vrot.slane %v320_v9, 4  ;;  %v5015_v22 = vld [vmem:[%s6972_s1 + $0x4d0] ss:$8 sps:$4 sm:$0xff]   ;;  %v1736_v24 = vrot.slane %v1734_v16, 5  ;;  %v5016_v25 = vld [vmem:[%s6972_s1 + $0x1e4] ss:$8 sps:$4 sm:$0xff]  }
  0x20   : > { %663 = vmatpush1.bf16.msra.mxu1 %v4972_v26  ;;  %v335_v19 = vrot.slane %v334_v10, 4  ;;  %v5036_v50 = vld [vmem:[%s6972_s1 + $0x14] ss:$8 sps:$4 sm:$0xff]   ;;  %v5034_v52 = vld [vmem:[%s6972_s1 + $0x10] ss:$8 sps:$4 sm:$0xff]  }
  0x21   : > { %2066 = vmatpush1.bf16.msra.mxu0 %v4973_v27  ;;  %664 = vmatprep.subr.bf16.mxu1 %v4974_v28  ;;  %v326_v26 = vsel %vm5684_vm2, %v321_v18, %v325_v63  ;;  %v5018_v28 = vld [vmem:[%s6972_s1 + $0x4e4] ss:$8 sps:$4 sm:$0xff]   ;;  %v5039_v51 = vld [vmem:[%s6972_s1 + $0x514] ss:$8 sps:$4 sm:$0xff]   ;;  %v5037_v53 = vld [vmem:[%s6972_s1 + $0x510] ss:$8 sps:$4 sm:$0xff]  }
  0x22   : > { %2067 = vmatprep.subr.bf16.mxu0 %v4976_v29  ;;  %v340_v27 = vsel %vm5684_vm2, %v335_v19, %v339_v2  ;;  %v5042_v54 = vld [vmem:[%s6972_s1 + $0x24] ss:$8 sps:$4 sm:$0xff]   ;;  %v5040_v56 = vld [vmem:[%s6972_s1 + $0x20] ss:$8 sps:$4 sm:$0xff]   ;;  %v5051_v59 = vld [vmem:[%s6972_s1 + $0x534] ss:$8 sps:$4 sm:$0xff]  }
  0x23   : > { %v4048_v29 = vcombine.high %v326_v26, %v340_v27  ;;  %v5045_v55 = vld [vmem:[%s6972_s1 + $0x524] ss:$8 sps:$4 sm:$0xff]   ;;  %v5046_v60 = vld [vmem:[%s6972_s1 + $0x30] ss:$8 sps:$4 sm:$0xff]   ;;  %v5052_v16 = vld [vmem:[%s6972_s1 + $0x40] ss:$8 sps:$4 sm:$0xff]  }
  0x24   : > { %665 = vmatpush1.bf16.msra.mxu1 %v4978_v30  ;;  %v1737_v30 = vor.u32 %v1736_v24, %v1733_v20  ;;  %v5780_v62 = vld [vmem:[%s5623_s29 + $0x30] sm:$0xff]  ;;  %v304_v63 = vld [vmem:[%s5623_s29 + $0x28] sm:$0x11]  ;;  %v305_v0 = vld [vmem:[%s5623_s29 + $0x38] sm:$0x11] }
  0x25   : > { %2068 = vmatpush1.bf16.msra.mxu0 %v4979_v31  ;;  %666 = vmatprep.subr.bf16.mxu1 %v4980_v32  ;;  %v1742_v31 = vrot.slane %v1740_v17, 5  ;;  %v5020_v32 = vld [vmem:[%s6972_s1 + $0x1e0] ss:$8 sps:$4 sm:$0xff]   ;;  %v356_v1 = vshrl.u32 %v5780_v62, 16  ;;  %v359_v2 = vshll.u32 %v5780_v62, 16  ;;  %v351_v9 = vshll.u32 %v304_v63, 16 }
  0x26   : > { %2069 = vmatprep.subr.bf16.mxu0 %v4982_v33  ;;  %v5021_v33 = vld [vmem:[%s6972_s1 + $0x4e0] ss:$8 sps:$4 sm:$0xff]   ;;  %682 = vmatprep.mubr.bf16.mxu1 %v4048_v29  ;;  %v365_v10 = vshll.u32 %v305_v0, 16  ;;  %v5057_v11 = vld [vmem:[%s6972_s1 + $0x544] ss:$8 sps:$4 sm:$0xff]  }
  0x27   : > { %v358_v12 = vrot.slane %v356_v1, 4  ;;  %v353_v17 = vrot.slane %v351_v9, 5  ;;  %v5802_v20 = vld [vmem:[%s5623_s29 + $0x48] sm:$0x11]  ;;  %v5063_v29 = vld [vmem:[%s6972_s1 + $0x554] ss:$8 sps:$4 sm:$0xff]  }
  0x28   : > { %667 = vmatpush1.bf16.msra.mxu1 %v4984_v34  ;;  %v1729_v34 = vsel %vm5684_vm2, %v335_v19, %v1728_v23  ;;  %v367_v18 = vrot.slane %v365_v10, 5  ;;  %v5799_v19 = vld [vmem:[%s5623_s29 + $0x40] sm:$0xff]  ;;  %v5861_v63 = vld [vmem:[%s5623_s29 + $0x58] sm:$0x11]  ;;  %v5864_v0 = vld [vmem:[%s5623_s29 + $0x68] sm:$0x11] }
  0x29   : > { %2070 = vmatpush1.bf16.msra.mxu0 %v4985_v35  ;;  %668 = vmatprep.subr.bf16.mxu1 %v4986_v36  ;;  %v5714_v35 = vrot.slane %v1737_v30, 4  ;;  %v5022_v36 = vld [vmem:[%s6972_s1 + $0x1f4] ss:$8 sps:$4 sm:$0xff]   ;;  %v1759_v23 = vshrl.u32 %v5799_v19, 16  ;;  %v1762_v24 = vshll.u32 %v5799_v19, 16  ;;  %v1782_v10 = vshll.u32 %v5861_v63, 16 }
  0x2a   : > { %2071 = vmatprep.subr.bf16.mxu0 %v4988_v37  ;;  %v5024_v37 = vld [vmem:[%s6972_s1 + $0x4f4] ss:$8 sps:$4 sm:$0xff]   ;;  %v5140_v48 = vld [vmem:[%s6972_s1 + $0x224] ss:$8 sps:$4 sm:$0xff]   ;;  %v5353_v15 = vld [vmem:[%s6972_s1 + $0x850] ss:$8 sps:$4 sm:$0xff]  }
  0x2b   : > { %v5072_v1 = vld [vmem:[%s6972_s1 + $0x74] ss:$8 sps:$4 sm:$0xff]   ;;  %v5143_v49 = vld [vmem:[%s6972_s1 + $0x624] ss:$8 sps:$4 sm:$0xff]  }
  0x2c   : > { %669 = vmatpush1.bf16.msra.mxu1 %v4990_v38  ;;  %v1743_v38 = vsel %vm5684_vm2, %v5714_v35, %v1742_v31 }
  0x2d   : > { %2072 = vmatpush1.bf16.msra.mxu0 %v4991_v39  ;;  %670 = vmatprep.subr.bf16.mxu1 %v4992_v40  ;;  %v4336_v39 = vcombine.high %v1729_v34, %v1743_v38  ;;  %v5026_v40 = vld [vmem:[%s6972_s1 + $0x1f0] ss:$8 sps:$4 sm:$0xff]  }
  0x2e   : > { %2073 = vmatprep.subr.bf16.mxu0 %v4994_v41  ;;  %v5027_v41 = vld [vmem:[%s6972_s1 + $0x4f0] ss:$8 sps:$4 sm:$0xff]  }
  0x2f   : > { %2085 = vmatprep.mubr.bf16.mxu0 %v4336_v39 }
  0x30   : > { %671 = vmatpush1.bf16.msra.mxu1 %v4996_v42  ;;  %v5030_v42 = vld [vmem:[%s6972_s1 + $0x4] ss:$8 sps:$4 sm:$0xff]  }
  0x31   : > { %2074 = vmatpush1.bf16.msra.mxu0 %v4997_v43  ;;  %672 = vmatprep.subr.bf16.mxu1 %v4998_v44  ;;  %v5033_v43 = vld [vmem:[%s6972_s1 + $0x504] ss:$8 sps:$4 sm:$0xff]   ;;  %v4047_v44 = vcombine.low %v326_v26, %v340_v27  ;;  %v5055_v26 = vld [vmem:[%s6972_s1 + $0x540] ss:$8 sps:$4 sm:$0xff]   ;;  %v5060_v27 = vld [vmem:[%s6972_s1 + $0x54] ss:$8 sps:$4 sm:$0xff]  }
  0x32   : > { %2075 = vmatprep.subr.bf16.mxu0 %v5000_v45  ;;  %v5028_v45 = vld [vmem:[%s6972_s1] ss:$8 sps:$4 sm:$0xff]  }
  0x34   : > { %673 = vmatpush1.bf16.msra.mxu1 %v5002_v46  ;;  %v4335_v46 = vcombine.low %v1729_v34, %v1743_v38  ;;  %v5058_v34 = vld [vmem:[%s6972_s1 + $0x50] ss:$8 sps:$4 sm:$0xff]  }
  0x35   : > { %2076 = vmatpush1.bf16.msra.mxu0 %v5003_v47  ;;  %674 = vmatprep.subr.bf16.mxu1 %v5004_v57  ;;  %v5031_v47 = vld [vmem:[%s6972_s1 + $0x500] ss:$8 sps:$4 sm:$0xff]  }
  0x36   : > { %2077 = vmatprep.subr.bf16.mxu0 %v5006_v58  ;;  %v5043_v57 = vld [vmem:[%s6972_s1 + $0x520] ss:$8 sps:$4 sm:$0xff]   ;;  %v5048_v58 = vld [vmem:[%s6972_s1 + $0x34] ss:$8 sps:$4 sm:$0xff]  }
  0x38   : > { %675 = vmatpush1.bf16.msra.mxu1 %v5008_v61  ;;  %v5049_v61 = vld [vmem:[%s6972_s1 + $0x530] ss:$8 sps:$4 sm:$0xff]  }
  0x39   : > { %2078 = vmatpush1.bf16.msra.mxu0 %v5009_v8  ;;  %676 = vmatprep.subr.bf16.mxu1 %v5010_v13  ;;  %v5054_v8 = vld [vmem:[%s6972_s1 + $0x44] ss:$8 sps:$4 sm:$0xff]   ;;  %v361_v13 = vrot.slane %v359_v2, 5 }
  0x3a   : > { %2079 = vmatprep.subr.bf16.mxu0 %v5012_v14  ;;  %v5793_v14 = vld [vmem:[%s5623_s29 + $0x38] sm:$0x11] }
  0x3c   : > { %677 = vmatpush1.bf16.msra.mxu1 %v5014_v21  ;;  %v1754_v21 = vshll.u32 %v5793_v14, 16 }
  0x3d   : > { %2080 = vmatpush1.bf16.msra.mxu0 %v5015_v22  ;;  %678 = vmatprep.subr.bf16.mxu1 %v5016_v25  ;;  %v362_v22 = vor.u32 %v361_v13, %v358_v12  ;;  %v1768_v25 = vshll.u32 %v5802_v20, 16 }
  0x3e   : > { %2081 = vmatprep.subr.bf16.mxu0 %v5018_v28  ;;  %v354_v28 = vsel %vm5684_vm2, %v5714_v35, %v353_v17  ;;  %v1756_v31 = vrot.slane %v1754_v21, 5  ;;  %v5061_v35 = vld [vmem:[%s6972_s1 + $0x550] ss:$8 sps:$4 sm:$0xff]  }
  0x3f   : > { %v363_v30 = vrot.slane %v362_v22, 4  ;;  %v5070_v17 = vld [vmem:[%s6972_s1 + $0x70] ss:$8 sps:$4 sm:$0xff]  }
  0x40   : > { %679 = vmatpush1.bf16.msra.mxu1 %v5020_v32  ;;  %v1761_v32 = vrot.slane %v1759_v23, 4  ;;  %v5073_v22 = vld [vmem:[%s6972_s1 + $0x570] ss:$8 sps:$4 sm:$0xff]   ;;  %v1784_v23 = vrot.slane %v1782_v10, 5 }
  0x41   : > { %2082 = vmatpush1.bf16.msra.mxu0 %v5021_v33  ;;  %680 = vmatprep.subr.bf16.mxu1 %v5022_v36  ;;  %v1764_v33 = vrot.slane %v1762_v24, 5  ;;  %v5066_v36 = vld [vmem:[%s6972_s1 + $0x64] ss:$8 sps:$4 sm:$0xff]   ;;  %v368_v38 = vsel %vm5684_vm2, %v363_v30, %v367_v18  ;;  %v5082_v10 = vld [vmem:[%s6972_s1 + $0x90] ss:$8 sps:$4 sm:$0xff]  }
  0x42   : > { %2083 = vmatprep.subr.bf16.mxu0 %v5024_v37  ;;  %v5069_v37 = vld [vmem:[%s6972_s1 + $0x564] ss:$8 sps:$4 sm:$0xff]  }
  0x43   : > { %v1765_v39 = vor.u32 %v1764_v33, %v1761_v32  ;;  %v5896_v33 = vld [vmem:[%s5623_s29 + $0x68] sm:$0x11] }
  0x44   : > { %681 = vmatpush1.bf16.msra.mxu1 %v5026_v40  ;;  %v1770_v40 = vrot.slane %v1768_v25, 5 }
  0x45   : > { %2084 = vmatpush1.bf16.msra.mxu0 %v5027_v41  ;;  %923 = vmatprep.subr.bf16.mxu1 %v5030_v42  ;;  %v5835_v41 = vld [vmem:[%s5623_s29 + $0x50] sm:$0xff]  ;;  %v4050_v42 = vcombine.high %v354_v28, %v368_v38 }
  0x46   : > { %2423 = vmatprep.subr.bf16.mxu0 %v5033_v43  ;;  %v4049_v43 = vcombine.low %v354_v28, %v368_v38 }
  0x47   : > { %683 = vmatmul.mubr.bf16.vlgmr.msra.gmra.mrb[0].mxu1 %v4047_v44  ;;  %v5838_v44 = vld [vmem:[%s5623_s29 + $0x48] sm:$0x11] }
  0x48   : > { %2086 = vmatmul.mubr.bf16.vlgmr.msra.gmra.mrb[0].mxu0 %v4335_v46  ;;  %924 = vmatpush1.bf16.msra.mxu1 %v5028_v45  ;;  %v5841_v45 = vld [vmem:[%s5623_s29 + $0x58] sm:$0x11]  ;;  %v384_v46 = vshrl.u32 %v5835_v41, 16 }
  0x49   : > { %2424 = vmatpush1.bf16.msra.mxu0 %v5031_v47  ;;  %925 = vmatprep.subr.bf16.mxu1 %v5036_v50  ;;  %v387_v47 = vshll.u32 %v5835_v41, 16  ;;  %v1757_v50 = vsel %vm5684_vm2, %v363_v30, %v1756_v31  ;;  %v5893_v30 = vld [vmem:[%s5623_s29 + $0x70] sm:$0xff] }
  0x4a   : > { %2425 = vmatprep.subr.bf16.mxu0 %v5039_v51  ;;  %v1766_v51 = vrot.slane %v1765_v39, 4  ;;  %692 = vmatprep.mubr.bf16.mxu1 %v4050_v42  ;;  %v407_v39 = vshll.u32 %v5896_v33, 16 }
  0x4c   : > { %926 = vmatpush1.bf16.msra.mxu1 %v5034_v52  ;;  %v379_v52 = vshll.u32 %v5838_v44, 16 }
  0x4d   : > { %2426 = vmatpush1.bf16.msra.mxu0 %v5037_v53  ;;  %927 = vmatprep.subr.bf16.mxu1 %v5042_v54  ;;  %v393_v53 = vshll.u32 %v5841_v45, 16  ;;  %v5064_v54 = vld [vmem:[%s6972_s1 + $0x60] ss:$8 sps:$4 sm:$0xff]  }
  0x4e   : > { %2427 = vmatprep.subr.bf16.mxu0 %v5045_v55  ;;  %v5067_v55 = vld [vmem:[%s6972_s1 + $0x560] ss:$8 sps:$4 sm:$0xff]  }
  0x4f   : > { %693 = vmatmul.mubr.bf16.gmra.mrb[4].mxu1 %v4049_v43  ;;  %v5084_v43 = vld [vmem:[%s6972_s1 + $0x94] ss:$8 sps:$4 sm:$0xff]  }
  0x50   : > { %928 = vmatpush1.bf16.msra.mxu1 %v5040_v56  ;;  %v386_v56 = vrot.slane %v384_v46, 4  ;;  %v5087_v46 = vld [vmem:[%s6972_s1 + $0x594] ss:$8 sps:$4 sm:$0xff]  }
  0x51   : > { %2428 = vmatpush1.bf16.msra.mxu0 %v5043_v57  ;;  %929 = vmatprep.subr.bf16.mxu1 %v5048_v58  ;;  %v389_v57 = vrot.slane %v387_v47, 5  ;;  %v5856_v58 = vld [vmem:[%s5623_s29 + $0x60] sm:$0xff] }
  0x52   : > { %2429 = vmatprep.subr.bf16.mxu0 %v5051_v59  ;;  %v1771_v59 = vsel %vm5684_vm2, %v1766_v51, %v1770_v40  ;;  %v1787_v12 = vshrl.u32 %v5856_v58, 16  ;;  %v1790_v13 = vshll.u32 %v5856_v58, 16  ;;  %v415_v40 = vshll.u32 %v5893_v30, 16 }
  0x53   : > { %v4338_v2 = vcombine.high %v1757_v50, %v1771_v59  ;;  %v390_v9 = vor.u32 %v389_v57, %v386_v56  ;;  %v5924_v56 = vld [vmem:[%s5623_s29 + $0x88] sm:$0x11] }
  0x54   : > { %930 = vmatpush1.bf16.msra.mxu1 %v5046_v60  ;;  %v381_v60 = vrot.slane %v379_v52, 5  ;;  %v1789_v24 = vrot.slane %v1787_v12, 4  ;;  %v1792_v25 = vrot.slane %v1790_v13, 5  ;;  %v5920_v52 = vld [vmem:[%s5623_s29 + $0x78] sm:$0x11] }
  0x55   : > { %2430 = vmatpush1.bf16.msra.mxu0 %v5049_v61  ;;  %931 = vmatprep.subr.bf16.mxu1 %v5054_v8  ;;  %v395_v61 = vrot.slane %v393_v53, 5  ;;  %v4337_v8 = vcombine.low %v1757_v50, %v1771_v59  ;;  %v391_v21 = vrot.slane %v390_v9, 4  ;;  %v409_v53 = vrot.slane %v407_v39, 5 }
  0x56   : > { %2431 = vmatprep.subr.bf16.mxu0 %v5057_v11  ;;  %v5075_v11 = vld [vmem:[%s6972_s1 + $0x574] ss:$8 sps:$4 sm:$0xff]   ;;  %2095 = vmatprep.mubr.bf16.mxu0 %v4338_v2  ;;  %v382_v18 = vsel %vm5684_vm2, %v1766_v51, %v381_v60  ;;  %v1793_v32 = vor.u32 %v1792_v25, %v1789_v24  ;;  %v1810_v59 = vshll.u32 %v5920_v52, 16 }
  0x57   : > { %2096 = vmatmul.mubr.bf16.gmra.mrb[4].mxu0 %v4337_v8  ;;  %v396_v28 = vsel %vm5684_vm2, %v391_v21, %v395_v61  ;;  %v1785_v47 = vsel %vm5684_vm2, %v391_v21, %v1784_v23  ;;  %v5093_v23 = vld [vmem:[%s6972_s1 + $0x5a4] ss:$8 sps:$4 sm:$0xff]  }
  0x58   : > { %932 = vmatpush1.bf16.msra.mxu1 %v5052_v16  ;;  %v1796_v16 = vshll.u32 %v5864_v0, 16  ;;  %v4052_v31 = vcombine.high %v382_v18, %v396_v28  ;;  %v4051_v38 = vcombine.low %v382_v18, %v396_v28  ;;  %v1794_v50 = vrot.slane %v1793_v32, 4  ;;  %v5088_v28 = vld [vmem:[%s6972_s1 + $0xa0] ss:$8 sps:$4 sm:$0xff]  }
  0x59   : > { %2432 = vmatpush1.bf16.msra.mxu0 %v5055_v26  ;;  %933 = vmatprep.subr.bf16.mxu1 %v5060_v27  ;;  %v5078_v26 = vld [vmem:[%s6972_s1 + $0x84] ss:$8 sps:$4 sm:$0xff]  }
  0x5a   : > { %2433 = vmatprep.subr.bf16.mxu0 %v5063_v29  ;;  %v5081_v27 = vld [vmem:[%s6972_s1 + $0x584] ss:$8 sps:$4 sm:$0xff]   ;;  %v1798_v29 = vrot.slane %v1796_v16, 5  ;;  %702 = vmatprep.mubr.bf16.mxu1 %v4052_v31  ;;  %v1824_v16 = vshll.u32 %v5924_v56, 16  ;;  %v410_v18 = vsel %vm5684_vm2, %v1794_v50, %v409_v53  ;;  %v5298_v31 = vld [vmem:[%s6972_s1 + $0x3b0] ss:$8 sps:$4 sm:$0xff]  }
  0x5b   : > { %703 = vmatmul.mubr.bf16.gmra.mrb[8].mxu1 %v4051_v38  ;;  %v5091_v38 = vld [vmem:[%s6972_s1 + $0x5a0] ss:$8 sps:$4 sm:$0xff]  }
  0x5c   : > { %934 = vmatpush1.bf16.msra.mxu1 %v5058_v34  ;;  %v5899_v34 = vld [vmem:[%s5623_s29 + $0x78] sm:$0x11]  ;;  %v1799_v57 = vsel %vm5684_vm2, %v1794_v50, %v1798_v29  ;;  %v1826_v25 = vrot.slane %v1824_v16, 5 }
  0x5d   : > { %2434 = vmatpush1.bf16.msra.mxu0 %v5061_v35  ;;  %935 = vmatprep.subr.bf16.mxu1 %v5066_v36  ;;  %v412_v35 = vshrl.u32 %v5893_v30, 16  ;;  %v5076_v36 = vld [vmem:[%s6972_s1 + $0x80] ss:$8 sps:$4 sm:$0xff]   ;;  %v421_v42 = vshll.u32 %v5899_v34, 16  ;;  %v4339_v2 = vcombine.low %v1785_v47, %v1799_v57  ;;  %v5094_v50 = vld [vmem:[%s6972_s1 + $0xb0] ss:$8 sps:$4 sm:$0xff]  }
  0x5e   : > { %2435 = vmatprep.subr.bf16.mxu0 %v5069_v37  ;;  %v5079_v37 = vld [vmem:[%s6972_s1 + $0x580] ss:$8 sps:$4 sm:$0xff]   ;;  %v5120_v16 = vld [vmem:[%s6972_s1 + $0xf4] ss:$8 sps:$4 sm:$0xff]  }
  0x5f   : > { %v414_v51 = vrot.slane %v412_v35, 4  ;;  %v423_v9 = vrot.slane %v421_v42, 5  ;;  %v5096_v42 = vld [vmem:[%s6972_s1 + $0xb4] ss:$8 sps:$4 sm:$0xff]  }
  0x60   : > { %936 = vmatpush1.bf16.msra.mxu1 %v5064_v54  ;;  %v417_v54 = vrot.slane %v415_v40, 5 }
  0x61   : > { %2436 = vmatpush1.bf16.msra.mxu0 %v5067_v55  ;;  %937 = vmatprep.subr.bf16.mxu1 %v5072_v1  ;;  %v4301_v55 = vld [vmem:[%s5623_s29 + $0x80] sm:$0xff]  ;;  %v4340_v1 = vcombine.high %v1785_v47, %v1799_v57 }
  0x62   : > { %2437 = vmatprep.subr.bf16.mxu0 %v5075_v11  ;;  %v1815_v60 = vshrl.u32 %v4301_v55, 16  ;;  %v1818_v61 = vshll.u32 %v4301_v55, 16  ;;  %v418_v8 = vor.u32 %v417_v54, %v414_v51  ;;  %v1812_v11 = vrot.slane %v1810_v59, 5  ;;  %v5097_v55 = vld [vmem:[%s6972_s1 + $0x5b0] ss:$8 sps:$4 sm:$0xff]  }
  0x63   : > { %2105 = vmatprep.mubr.bf16.mxu0 %v4340_v1  ;;  %v5102_v57 = vld [vmem:[%s6972_s1 + $0xc4] ss:$8 sps:$4 sm:$0xff]   ;;  %v5103_v1 = vld [vmem:[%s6972_s1 + $0x5c0] ss:$8 sps:$4 sm:$0xff]  }
  0x64   : > { %938 = vmatpush1.bf16.msra.mxu1 %v5070_v17  ;;  %v1817_v12 = vrot.slane %v1815_v60, 4  ;;  %v1820_v13 = vrot.slane %v1818_v61, 5  ;;  %v5085_v17 = vld [vmem:[%s6972_s1 + $0x590] ss:$8 sps:$4 sm:$0xff]   ;;  %v419_v21 = vrot.slane %v418_v8, 4  ;;  %2106 = vmatmul.mubr.bf16.gmra.mrb[8].mxu0 %v4339_v2 }
  0x65   : > { %2438 = vmatpush1.bf16.msra.mxu0 %v5073_v22  ;;  %939 = vmatprep.subr.bf16.mxu1 %v5078_v26  ;;  %v5090_v22 = vld [vmem:[%s6972_s1 + $0xa4] ss:$8 sps:$4 sm:$0xff]   ;;  %v2168_v26 = vrot.slane %v5659_v3, 5  ;;  %v5100_v61 = vld [vmem:[%s6972_s1 + $0xc0] ss:$8 sps:$4 sm:$0xff]  }
  0x66   : > { %2439 = vmatprep.subr.bf16.mxu0 %v5081_v27  ;;  %v1821_v24 = vor.u32 %v1820_v13, %v1817_v12  ;;  %v2172_v27 = vrot.slane %v5665_v5, 5  ;;  %v424_v29 = vsel %vm5684_vm2, %v419_v21, %v423_v9  ;;  %v1813_v3 = vsel %vm5684_vm2, %v419_v21, %v1812_v11  ;;  %v5105_v59 = vld [vmem:[%s6972_s1 + $0x5c4] ss:$8 sps:$4 sm:$0xff]   ;;  %v5108_v2 = vld [vmem:[%s6972_s1 + $0xd4] ss:$8 sps:$4 sm:$0xff]  }
  0x67   : > { %v4054_v32 = vcombine.high %v410_v18, %v424_v29  ;;  %v4053_v35 = vcombine.low %v410_v18, %v424_v29  ;;  %v5106_v8 = vld [vmem:[%s6972_s1 + $0xd0] ss:$8 sps:$4 sm:$0xff]   ;;  %v5117_v11 = vld [vmem:[%s6972_s1 + $0x5e4] ss:$8 sps:$4 sm:$0xff]   ;;  %v5112_v12 = vld [vmem:[%s6972_s1 + $0xe0] ss:$8 sps:$4 sm:$0xff]  }
  0x68   : > { %940 = vmatpush1.bf16.msra.mxu1 %v5076_v36  ;;  %v1822_v5 = vrot.slane %v1821_v24, 4  ;;  %v4375_v36 = vld [vmem:[%s5623_s29 + $0x10] sm:$0xee]  ;;  %v5115_v13 = vld [vmem:[%s6972_s1 + $0x5e0] ss:$8 sps:$4 sm:$0xff]   ;;  %v2176_v29 = vrot.slane %v5793_v14, 5 }
  0x69   : > { %2440 = vmatpush1.bf16.msra.mxu0 %v5079_v37  ;;  %941 = vmatprep.subr.bf16.mxu1 %v5084_v43  ;;  %v4376_v37 = vld [vmem:[%s5623_s29 + $0x20] sm:$0xee]  ;;  %v4383_v39 = vrot.slane %v4375_v36, 9  ;;  %v5099_v43 = vld [vmem:[%s6972_s1 + $0x5b4] ss:$8 sps:$4 sm:$0xff]  }
  0x6a   : > { %2441 = vmatprep.subr.bf16.mxu0 %v5087_v46  ;;  %v4384_v40 = vrot.slane %v4376_v37, 9  ;;  %v1827_v46 = vsel %vm5684_vm2, %v1822_v5, %v1826_v25  ;;  %712 = vmatprep.mubr.bf16.mxu1 %v4054_v32  ;;  %v5109_v9 = vld [vmem:[%s6972_s1 + $0x5d0] ss:$8 sps:$4 sm:$0xff]   ;;  %v5125_v24 = vld [vmem:[%s6972_s1 + $0x200] ss:$8 sps:$4 sm:$0xff]   ;;  %v2180_v32 = vrot.slane %v5802_v20, 5 }
  0x6b   : > { %v4342_v47 = vcombine.high %v1813_v3, %v1827_v46  ;;  %713 = vmatmul.mubr.bf16.gmra.mrb[12].mxu1 %v4053_v35  ;;  %v4341_v51 = vcombine.low %v1813_v3, %v1827_v46  ;;  %v2169_v53 = vsel %vm5953_vm5, %v4383_v39, %v2168_v26  ;;  %v5118_v18 = vld [vmem:[%s6972_s1 + $0xf0] ss:$8 sps:$4 sm:$0xff]   ;;  %v5128_v26 = vld [vmem:[%s6972_s1 + $0x600] ss:$8 sps:$4 sm:$0xff]   ;;  %v4090_v3 = vcombine.high %v5662_v4, %v5780_v62 }
  0x6c   : > { %942 = vmatpush1.bf16.msra.mxu1 %v5082_v10  ;;  %v2173_v54 = vsel %vm5953_vm5, %v4384_v40, %v2172_v27  ;;  %955 = vmatprep.mubr.bf16.mxu1 %v4088_v6  ;;  %v5111_v6 = vld [vmem:[%s6972_s1 + $0x5d4] ss:$8 sps:$4 sm:$0xff]   ;;  %v5114_v10 = vld [vmem:[%s6972_s1 + $0xe4] ss:$8 sps:$4 sm:$0xff]   ;;  %v5121_v21 = vld [vmem:[%s6972_s1 + $0x5f0] ss:$8 sps:$4 sm:$0xff]  }
  0x6d   : > { %2442 = vmatpush1.bf16.msra.mxu0 %v5085_v17  ;;  %943 = vmatprep.subr.bf16.mxu1 %v5090_v22  ;;  %v4424_v60 = vcombine.high %v2169_v53, %v2173_v54  ;;  %v5123_v17 = vld [vmem:[%s6972_s1 + $0x5f4] ss:$8 sps:$4 sm:$0xff]   ;;  %v5127_v22 = vld [vmem:[%s6972_s1 + $0x204] ss:$8 sps:$4 sm:$0xff]   ;;  %v4423_v25 = vcombine.low %v2169_v53, %v2173_v54  ;;  %v5132_v36 = vld [vmem:[%s6972_s1 + $0x210] ss:$8 sps:$4 sm:$0xff]  }
  0x6e   : > { %2443 = vmatprep.subr.bf16.mxu0 %v5093_v23  ;;  %2115 = vmatprep.mubr.bf16.mxu0 %v4342_v47  ;;  %v5130_v23 = vld [vmem:[%s6972_s1 + $0x604] ss:$8 sps:$4 sm:$0xff]   ;;  %v5134_v27 = vld [vmem:[%s6972_s1 + $0x214] ss:$8 sps:$4 sm:$0xff]   ;;  %v5135_v14 = vld [vmem:[%s6972_s1 + $0x610] ss:$8 sps:$4 sm:$0xff]  }
  0x6f   : > { %2116 = vmatmul.mubr.bf16.gmra.mrb[12].mxu0 %v4341_v51  ;;  %v4377_v5 = vld [vmem:[%s5623_s29 + $0x30] sm:$0xee]  ;;  %v4378_v35 = vld [vmem:[%s5623_s29 + $0x40] sm:$0xee]  ;;  %v2184_v47 = vrot.slane %v5861_v63, 5  ;;  %v4092_v63 = vcombine.high %v5799_v19, %v5835_v41 }
  0x70   : > { %944 = vmatpush1.bf16.msra.mxu1 %v5088_v28  ;;  %2455 = vmatprep.mubr.bf16.mxu0 %v4424_v60  ;;  %v5137_v28 = vld [vmem:[%s6972_s1 + $0x614] ss:$8 sps:$4 sm:$0xff]   ;;  %v4385_v37 = vrot.slane %v4377_v5, 9  ;;  %v5138_v39 = vld [vmem:[%s6972_s1 + $0x220] ss:$8 sps:$4 sm:$0xff]  }
  0x71   : > { %2444 = vmatpush1.bf16.msra.mxu0 %v5091_v38  ;;  %945 = vmatprep.subr.bf16.mxu1 %v5096_v42  ;;  %v4386_v38 = vrot.slane %v4378_v35, 9  ;;  %v5141_v42 = vld [vmem:[%s6972_s1 + $0x620] ss:$8 sps:$4 sm:$0xff]   ;;  %v5146_v51 = vld [vmem:[%s6972_s1 + $0x234] ss:$8 sps:$4 sm:$0xff]  }
  0x72   : > { %2445 = vmatprep.subr.bf16.mxu0 %v5099_v43  ;;  %v4089_v43 = vcombine.low %v5662_v4, %v5780_v62  ;;  %v4379_v53 = vld [vmem:[%s5623_s29 + $0x50] sm:$0xee]  ;;  %v4380_v54 = vld [vmem:[%s5623_s29 + $0x60] sm:$0xee] }
  0x73   : > { %v2181_v20 = vsel %vm5953_vm5, %v4386_v38, %v2180_v32  ;;  %v4387_v4 = vrot.slane %v4379_v53, 9  ;;  %v996_v32 = vld [vmem:[%s5623_s29] sm:$0xee] }
  0x74   : > { %946 = vmatpush1.bf16.msra.mxu1 %v5094_v50  ;;  %v2188_v50 = vrot.slane %v5864_v0, 5  ;;  %v5144_v0 = vld [vmem:[%s6972_s1 + $0x230] ss:$8 sps:$4 sm:$0xff]   ;;  %v5164_v5 = vld [vmem:[%s6972_s1 + $0x264] ss:$8 sps:$4 sm:$0xff]   ;;  %v4127_v35 = vrot.slane %v996_v32, 9 }
  0x75   : > { %2446 = vmatpush1.bf16.msra.mxu0 %v5097_v55  ;;  %947 = vmatprep.subr.bf16.mxu1 %v5102_v57  ;;  %v5149_v55 = vld [vmem:[%s6972_s1 + $0x634] ss:$8 sps:$4 sm:$0xff]   ;;  %v4388_v57 = vrot.slane %v4380_v54, 9  ;;  %v5162_v38 = vld [vmem:[%s6972_s1 + $0x260] ss:$8 sps:$4 sm:$0xff]   ;;  %v1045_v32 = vrot.slane %v5841_v45, 5 }
  0x76   : > { %2447 = vmatprep.subr.bf16.mxu0 %v5105_v59  ;;  %v2185_v59 = vsel %vm5953_vm5, %v4387_v4, %v2184_v47  ;;  %v5171_v47 = vld [vmem:[%s6972_s1 + $0x670] ss:$8 sps:$4 sm:$0xff]   ;;  %v5177_v53 = vld [vmem:[%s6972_s1 + $0x680] ss:$8 sps:$4 sm:$0xff]   ;;  %v5182_v54 = vld [vmem:[%s6972_s1 + $0x294] ss:$8 sps:$4 sm:$0xff]  }
  0x77   : > { %v2189_v60 = vsel %vm5953_vm5, %v4388_v57, %v2188_v50  ;;  %v5176_v50 = vld [vmem:[%s6972_s1 + $0x284] ss:$8 sps:$4 sm:$0xff]   ;;  %v5180_v4 = vld [vmem:[%s6972_s1 + $0x290] ss:$8 sps:$4 sm:$0xff]   ;;  %v5224_v45 = vld [vmem:[%s6972_s1 + $0x2f4] ss:$8 sps:$4 sm:$0xff]  }
  0x78   : > { %948 = vmatpush1.bf16.msra.mxu1 %v5100_v61  ;;  %v5147_v61 = vld [vmem:[%s6972_s1 + $0x630] ss:$8 sps:$4 sm:$0xff]  }
  0x79   : > { %2448 = vmatpush1.bf16.msra.mxu0 %v5103_v1  ;;  %949 = vmatprep.subr.bf16.mxu1 %v5108_v2  ;;  %v5152_v1 = vld [vmem:[%s6972_s1 + $0x244] ss:$8 sps:$4 sm:$0xff]   ;;  %v4428_v2 = vcombine.high %v2185_v59, %v2189_v60  ;;  %v5183_v57 = vld [vmem:[%s6972_s1 + $0x690] ss:$8 sps:$4 sm:$0xff]  }
  0x7a   : > { %2449 = vmatprep.subr.bf16.mxu0 %v5111_v6  ;;  %v5155_v6 = vld [vmem:[%s6972_s1 + $0x644] ss:$8 sps:$4 sm:$0xff]  }
  0x7c   : > { %950 = vmatpush1.bf16.msra.mxu1 %v5106_v8  ;;  %v2192_v8 = vrot.slane %v5920_v52, 5  ;;  %v5153_v52 = vld [vmem:[%s6972_s1 + $0x640] ss:$8 sps:$4 sm:$0xff]  }
  0x7d   : > { %2450 = vmatpush1.bf16.msra.mxu0 %v5109_v9  ;;  %951 = vmatprep.subr.bf16.mxu1 %v5114_v10  ;;  %v2196_v9 = vrot.slane %v5924_v56, 5  ;;  %v4381_v10 = vld [vmem:[%s5623_s29 + $0x70] sm:$0xee]  ;;  %v5404_v56 = vld [vmem:[%s5623_s29 + $0x8] sm:$0x11] }
  0x7e   : > { %2451 = vmatprep.subr.bf16.mxu0 %v5117_v11  ;;  %v4382_v11 = vld [vmem:[%s5623_s29 + $0x80] sm:$0xee] }
  0x80   : > { %952 = vmatpush1.bf16.msra.mxu1 %v5112_v12  ;;  %v5150_v12 = vld [vmem:[%s6972_s1 + $0x240] ss:$8 sps:$4 sm:$0xff]  }
  0x81   : > { %2452 = vmatpush1.bf16.msra.mxu0 %v5115_v13  ;;  %953 = vmatprep.subr.bf16.mxu1 %v5120_v16  ;;  %v4091_v13 = vcombine.low %v5799_v19, %v5835_v41  ;;  %v4427_v16 = vcombine.low %v2185_v59, %v2189_v60  ;;  %v5161_v19 = vld [vmem:[%s6972_s1 + $0x654] ss:$8 sps:$4 sm:$0xff]   ;;  %v5187_v59 = vld [vmem:[%s6972_s1 + $0x2a0] ss:$8 sps:$4 sm:$0xff]  }
  0x82   : > { %2453 = vmatprep.subr.bf16.mxu0 %v5123_v17  ;;  %v4389_v17 = vrot.slane %v4381_v10, 9  ;;  %v5190_v60 = vld [vmem:[%s6972_s1 + $0x6a0] ss:$8 sps:$4 sm:$0xff]  }
  0x83   : > { %v5406_v10 = vld [vmem:[%s5623_s29 + $0x28] sm:$0x11] }
  0x84   : > { %954 = vmatpush1.bf16.msra.mxu1 %v5118_v18  ;;  %v4390_v18 = vrot.slane %v4382_v11, 9  ;;  %v2193_v41 = vsel %vm5953_vm5, %v4389_v17, %v2192_v8  ;;  %v5203_v8 = vld [vmem:[%s6972_s1 + $0x2c4] ss:$8 sps:$4 sm:$0xff]   ;;  %v1033_v11 = vrot.slane %v5406_v10, 5 }
  0x85   : > { %2454 = vmatpush1.bf16.msra.mxu0 %v5121_v21  ;;  %1280 = vmatprep.subr.bf16.mxu1 %v5127_v22  ;;  %v1025_v21 = vrot.slane %v5404_v56, 5  ;;  %v5158_v22 = vld [vmem:[%s6972_s1 + $0x254] ss:$8 sps:$4 sm:$0xff]   ;;  %v5204_v56 = vld [vmem:[%s6972_s1 + $0x6c0] ss:$8 sps:$4 sm:$0xff]  }
  0x86   : > { %2754 = vmatprep.subr.bf16.mxu0 %v5130_v23  ;;  %v2197_v23 = vsel %vm5953_vm5, %v4390_v18, %v2196_v9  ;;  %v5206_v9 = vld [vmem:[%s6972_s1 + $0x6c4] ss:$8 sps:$4 sm:$0xff]   ;;  %v999_v18 = vld [vmem:[%s5623_s29 + $0x30] sm:$0xee] }
  0x87   : > { %956 = vmatmul.mubr.bf16.vlgmr.msra.gmra.mrb[0].mxu1 %v4087_v7  ;;  %v2177_v7 = vsel %vm5953_vm5, %v4385_v37, %v2176_v29  ;;  %v4430_v29 = vcombine.high %v2193_v41, %v2197_v23  ;;  %v5167_v37 = vld [vmem:[%s6972_s1 + $0x664] ss:$8 sps:$4 sm:$0xff]  }
  0x88   : > { %2456 = vmatmul.mubr.bf16.vlgmr.msra.gmra.mrb[0].mxu0 %v4423_v25  ;;  %1281 = vmatpush1.bf16.msra.mxu1 %v5125_v24  ;;  %v4426_v40 = vcombine.high %v2177_v7, %v2181_v20  ;;  %v4425_v46 = vcombine.low %v2177_v7, %v2181_v20  ;;  %v5405_v24 = vld [vmem:[%s5623_s29 + $0x18] sm:$0x11]  ;;  %v4093_v7 = vcombine.low %v5856_v58, %v5893_v30 }
  0x89   : > { %2755 = vmatpush1.bf16.msra.mxu0 %v5128_v26  ;;  %1282 = vmatprep.subr.bf16.mxu1 %v5134_v27  ;;  %v1029_v25 = vrot.slane %v5405_v24, 5  ;;  %v5156_v26 = vld [vmem:[%s6972_s1 + $0x250] ss:$8 sps:$4 sm:$0xff]   ;;  %v4429_v20 = vcombine.low %v2193_v41, %v2197_v23 }
  0x8a   : > { %2756 = vmatprep.subr.bf16.mxu0 %v5137_v28  ;;  %965 = vmatprep.mubr.bf16.mxu1 %v4090_v3  ;;  %v5159_v27 = vld [vmem:[%s6972_s1 + $0x650] ss:$8 sps:$4 sm:$0xff]   ;;  %v4094_v28 = vcombine.high %v5856_v58, %v5893_v30  ;;  %v5173_v58 = vld [vmem:[%s6972_s1 + $0x674] ss:$8 sps:$4 sm:$0xff]  }
  0x8b   : > { %2465 = vmatprep.mubr.bf16.mxu0 %v4426_v40  ;;  %v997_v3 = vld [vmem:[%s5623_s29 + $0x10] sm:$0xee] }
  0x8c   : > { %1283 = vmatpush1.bf16.msra.mxu1 %v5132_v36  ;;  %v4128_v36 = vrot.slane %v997_v3, 9  ;;  %v5208_v24 = vld [vmem:[%s6972_s1 + $0x2d0] ss:$8 sps:$4 sm:$0xff]   ;;  %v5220_v3 = vld [vmem:[%s6972_s1 + $0x6e4] ss:$8 sps:$4 sm:$0xff]  }
  0x8d   : > { %2757 = vmatpush1.bf16.msra.mxu0 %v5135_v14  ;;  %1284 = vmatprep.subr.bf16.mxu1 %v5140_v48  ;;  %v6157_v14 = vsel %vm5953_vm5, %v4127_v35, %v1025_v21  ;;  %v5210_v21 = vld [vmem:[%s6972_s1 + $0x2d4] ss:$8 sps:$4 sm:$0xff]  }
  0x8e   : > { %2758 = vmatprep.subr.bf16.mxu0 %v5143_v49  ;;  %v6161_v48 = vsel %vm5953_vm5, %v4128_v36, %v1029_v25  ;;  %v5165_v49 = vld [vmem:[%s6972_s1 + $0x660] ss:$8 sps:$4 sm:$0xff]   ;;  %v5211_v25 = vld [vmem:[%s6972_s1 + $0x6d0] ss:$8 sps:$4 sm:$0xff]  }
  0x8f   : > { %966 = vmatmul.mubr.bf16.gmra.mrb[4].mxu1 %v4089_v43  ;;  %v4168_v40 = vcombine.high %v6157_v14, %v6161_v48  ;;  %v5170_v43 = vld [vmem:[%s6972_s1 + $0x274] ss:$8 sps:$4 sm:$0xff]   ;;  %v5215_v36 = vld [vmem:[%s6972_s1 + $0x2e0] ss:$8 sps:$4 sm:$0xff]  }
  0x90   : > { %2466 = vmatmul.mubr.bf16.gmra.mrb[4].mxu0 %v4425_v46  ;;  %1285 = vmatpush1.bf16.msra.mxu1 %v5138_v39  ;;  %v4167_v39 = vcombine.low %v6157_v14, %v6161_v48  ;;  %v5168_v46 = vld [vmem:[%s6972_s1 + $0x270] ss:$8 sps:$4 sm:$0xff]   ;;  %v5244_v14 = vld [vmem:[%s6972_s1 + $0x324] ss:$8 sps:$4 sm:$0xff]  }
  0x91   : > { %2759 = vmatpush1.bf16.msra.mxu0 %v5141_v42  ;;  %1286 = vmatprep.subr.bf16.mxu1 %v5146_v51  ;;  %v6173_v42 = vld [vmem:[%s5623_s29 + $0x20] sm:$0xff]  ;;  %v1001_v35 = vld [vmem:[%s5623_s29 + $0x50] sm:$0xee] }
  0x92   : > { %2760 = vmatprep.subr.bf16.mxu0 %v5149_v55  ;;  %975 = vmatprep.mubr.bf16.mxu1 %v4092_v63  ;;  %v4504_v30 = vcombine.high %v6173_v42, %v5780_v62  ;;  %v5179_v62 = vld [vmem:[%s6972_s1 + $0x684] ss:$8 sps:$4 sm:$0xff]   ;;  %v5174_v51 = vld [vmem:[%s6972_s1 + $0x280] ss:$8 sps:$4 sm:$0xff]   ;;  %v5185_v55 = vld [vmem:[%s6972_s1 + $0x694] ss:$8 sps:$4 sm:$0xff]  }
  0x93   : > { %2475 = vmatprep.mubr.bf16.mxu0 %v4428_v2  ;;  %v5189_v63 = vld [vmem:[%s6972_s1 + $0x2a4] ss:$8 sps:$4 sm:$0xff]   ;;  %v5194_v2 = vld [vmem:[%s6972_s1 + $0x2b0] ss:$8 sps:$4 sm:$0xff]  }
  0x94   : > { %1287 = vmatpush1.bf16.msra.mxu1 %v5144_v0  ;;  %v5192_v0 = vld [vmem:[%s6972_s1 + $0x6a4] ss:$8 sps:$4 sm:$0xff]  }
  0x95   : > { %2761 = vmatpush1.bf16.msra.mxu0 %v5147_v61  ;;  %1288 = vmatprep.subr.bf16.mxu1 %v5152_v1  ;;  %v5196_v61 = vld [vmem:[%s6972_s1 + $0x2b4] ss:$8 sps:$4 sm:$0xff]   ;;  %v5247_v48 = vld [vmem:[%s6972_s1 + $0x724] ss:$8 sps:$4 sm:$0xff]  }
  0x96   : > { %2762 = vmatprep.subr.bf16.mxu0 %v5155_v6  ;;  %v5199_v1 = vld [vmem:[%s6972_s1 + $0x6b4] ss:$8 sps:$4 sm:$0xff]   ;;  %v5197_v6 = vld [vmem:[%s6972_s1 + $0x6b0] ss:$8 sps:$4 sm:$0xff]  }
  0x97   : > { %976 = vmatmul.mubr.bf16.gmra.mrb[8].mxu1 %v4091_v13  ;;  %v998_v13 = vld [vmem:[%s5623_s29 + $0x20] sm:$0xee] }
  0x98   : > { %2476 = vmatmul.mubr.bf16.gmra.mrb[8].mxu0 %v4427_v16  ;;  %1289 = vmatpush1.bf16.msra.mxu1 %v5150_v12  ;;  %v5201_v12 = vld [vmem:[%s6972_s1 + $0x2c0] ss:$8 sps:$4 sm:$0xff]   ;;  %v5407_v16 = vld [vmem:[%s5623_s29 + $0x38] sm:$0x11] }
  0x99   : > { %2763 = vmatpush1.bf16.msra.mxu0 %v5153_v52  ;;  %1290 = vmatprep.subr.bf16.mxu1 %v5158_v22  ;;  %v1037_v17 = vrot.slane %v5407_v16, 5  ;;  %v4129_v52 = vrot.slane %v998_v13, 9  ;;  %v4130_v22 = vrot.slane %v999_v18, 9  ;;  %v5236_v16 = vld [vmem:[%s6972_s1 + $0x310] ss:$8 sps:$4 sm:$0xff]  }
  0x9a   : > { %2764 = vmatprep.subr.bf16.mxu0 %v5161_v19  ;;  %985 = vmatprep.mubr.bf16.mxu1 %v4094_v28  ;;  %v5213_v19 = vld [vmem:[%s6972_s1 + $0x6d4] ss:$8 sps:$4 sm:$0xff]   ;;  %v5217_v28 = vld [vmem:[%s6972_s1 + $0x2e4] ss:$8 sps:$4 sm:$0xff]  }
  0x9b   : > { %2485 = vmatprep.mubr.bf16.mxu0 %v4430_v29  ;;  %v6261_v41 = vsel %vm5953_vm5, %v4129_v52, %v1033_v11  ;;  %v6265_v23 = vsel %vm5953_vm5, %v4130_v22, %v1037_v17  ;;  %v1041_v29 = vrot.slane %v5838_v44, 5  ;;  %v5218_v44 = vld [vmem:[%s6972_s1 + $0x6e0] ss:$8 sps:$4 sm:$0xff]   ;;  %v5239_v17 = vld [vmem:[%s6972_s1 + $0x710] ss:$8 sps:$4 sm:$0xff]   ;;  %v2863_v52 = vshll.u32 %v6173_v42, 16 }
  0x9c   : > { %1291 = vmatpush1.bf16.msra.mxu1 %v5156_v26  ;;  %v4170_v26 = vcombine.high %v6261_v41, %v6265_v23  ;;  %v6384_v18 = vld [vmem:[%s5623_s29 + $0x30] sm:$0xff] }
  0x9d   : > { %2765 = vmatpush1.bf16.msra.mxu0 %v5159_v27  ;;  %1292 = vmatprep.subr.bf16.mxu1 %v5164_v5  ;;  %v4169_v27 = vcombine.low %v6261_v41, %v6265_v23  ;;  %v1000_v5 = vld [vmem:[%s5623_s29 + $0x40] sm:$0xee]  ;;  %v2877_v22 = vshll.u32 %v6384_v18, 16 }
  0x9e   : > { %2766 = vmatprep.subr.bf16.mxu0 %v5167_v37  ;;  %v4131_v37 = vrot.slane %v1000_v5, 9  ;;  %v5251_v5 = vld [vmem:[%s6972_s1 + $0x730] ss:$8 sps:$4 sm:$0xff]   ;;  %v5259_v41 = vld [vmem:[%s6972_s1 + $0x744] ss:$8 sps:$4 sm:$0xff]  }
  0x9f   : > { %986 = vmatmul.mubr.bf16.gmra.mrb[12].mxu1 %v4093_v7  ;;  %v6300_v7 = vld [vmem:[%s5623_s29 + $0x50] sm:$0xff] }
  0xa0   : > { %2486 = vmatmul.mubr.bf16.gmra.mrb[12].mxu0 %v4429_v20  ;;  %1293 = vmatpush1.bf16.msra.mxu1 %v5162_v38  ;;  %v4132_v38 = vrot.slane %v1001_v35, 9  ;;  %v6304_v20 = vsel %vm5953_vm5, %v4131_v37, %v1041_v29  ;;  %v6425_v37 = vld [vmem:[%s5623_s29 + $0x28] sm:$0x11] }
  0xa1   : > { %2767 = vmatpush1.bf16.msra.mxu0 %v5165_v49  ;;  %1294 = vmatprep.subr.bf16.mxu1 %v5170_v43  ;;  %v5227_v49 = vld [vmem:[%s6972_s1 + $0x6f4] ss:$8 sps:$4 sm:$0xff]  }
  0xa2   : > { %2768 = vmatprep.subr.bf16.mxu0 %v5173_v58  ;;  %1312 = vmatprep.mubr.bf16.mxu1 %v4168_v40  ;;  %v6308_v40 = vsel %vm5953_vm5, %v4132_v38, %v1045_v32  ;;  %v6428_v38 = vld [vmem:[%s5623_s29 + $0x38] sm:$0x11] }
  0xa3   : > { %2786 = vmatprep.mubr.bf16.mxu0 %v4504_v30  ;;  %v4172_v43 = vcombine.high %v6304_v20, %v6308_v40  ;;  %v4171_v58 = vcombine.low %v6304_v20, %v6308_v40  ;;  %v6315_v30 = vld [vmem:[%s5623_s29 + $0x60] sm:$0xff] }
  0xa4   : > { %1295 = vmatpush1.bf16.msra.mxu1 %v5168_v46  ;;  %v5222_v46 = vld [vmem:[%s6972_s1 + $0x2f0] ss:$8 sps:$4 sm:$0xff]   ;;  %v5268_v20 = vld [vmem:[%s6972_s1 + $0x364] ss:$8 sps:$4 sm:$0xff]  }
  0xa5   : > { %2769 = vmatpush1.bf16.msra.mxu0 %v5171_v47  ;;  %1296 = vmatprep.subr.bf16.mxu1 %v5176_v50  ;;  %v5225_v47 = vld [vmem:[%s6972_s1 + $0x6f0] ss:$8 sps:$4 sm:$0xff]   ;;  %v1049_v50 = vrot.slane %v5896_v33, 5  ;;  %v5271_v40 = vld [vmem:[%s6972_s1 + $0x764] ss:$8 sps:$4 sm:$0xff]  }
  0xa6   : > { %2770 = vmatprep.subr.bf16.mxu0 %v5179_v62  ;;  %v4251_v62 = vcombine.low %v6300_v7, %v6315_v30  ;;  %v6336_v33 = vld [vmem:[%s5623_s29 + $0x70] sm:$0xff] }
  0xa7   : > { %v4508_v29 = vcombine.high %v6315_v30, %v6336_v33 }
  0xa8   : > { %1297 = vmatpush1.bf16.msra.mxu1 %v5174_v51  ;;  %v5230_v51 = vld [vmem:[%s6972_s1 + $0x304] ss:$8 sps:$4 sm:$0xff]  }
  0xa9   : > { %2771 = vmatpush1.bf16.msra.mxu0 %v5177_v53  ;;  %1298 = vmatprep.subr.bf16.mxu1 %v5182_v54  ;;  %v5235_v53 = vld [vmem:[%s6972_s1 + $0x704] ss:$8 sps:$4 sm:$0xff]   ;;  %v1053_v54 = vrot.slane %v5899_v34, 5 }
  0xaa   : > { %2772 = vmatprep.subr.bf16.mxu0 %v5185_v55  ;;  %v1002_v55 = vld [vmem:[%s5623_s29 + $0x60] sm:$0xee] }
  0xac   : > { %1299 = vmatpush1.bf16.msra.mxu1 %v5180_v4  ;;  %v1003_v4 = vld [vmem:[%s5623_s29 + $0x70] sm:$0xee] }
  0xad   : > { %2773 = vmatpush1.bf16.msra.mxu0 %v5183_v57  ;;  %1300 = vmatprep.subr.bf16.mxu1 %v5189_v63  ;;  %v4133_v57 = vrot.slane %v1002_v55, 9  ;;  %v4134_v63 = vrot.slane %v1003_v4, 9 }
  0xae   : > { %2774 = vmatprep.subr.bf16.mxu0 %v5192_v0  ;;  %v6339_v0 = vld [vmem:[%s5623_s29 + $0x80] sm:$0xff] }
  0xaf   : > { %v4253_v34 = vcombine.low %v6336_v33, %v6339_v0 }
  0xb0   : > { %1301 = vmatpush1.bf16.msra.mxu1 %v5187_v59  ;;  %v5228_v59 = vld [vmem:[%s6972_s1 + $0x300] ss:$8 sps:$4 sm:$0xff]  }
  0xb1   : > { %2775 = vmatpush1.bf16.msra.mxu0 %v5190_v60  ;;  %1302 = vmatprep.subr.bf16.mxu1 %v5196_v61  ;;  %v5408_v60 = vld [vmem:[%s5623_s29 + $0x30] sm:$0xff] }
  0xb2   : > { %2776 = vmatprep.subr.bf16.mxu0 %v5199_v1  ;;  %v4503_v61 = vcombine.low %v6173_v42, %v5408_v60  ;;  %v5233_v1 = vld [vmem:[%s6972_s1 + $0x700] ss:$8 sps:$4 sm:$0xff]   ;;  %v5263_v60 = vld [vmem:[%s6972_s1 + $0x750] ss:$8 sps:$4 sm:$0xff]  }
  0xb4   : > { %1303 = vmatpush1.bf16.msra.mxu1 %v5194_v2  ;;  %v6352_v2 = vld [vmem:[%s5623_s29 + $0x40] sm:$0xff] }
  0xb5   : > { %2777 = vmatpush1.bf16.msra.mxu0 %v5197_v6  ;;  %1304 = vmatprep.subr.bf16.mxu1 %v5203_v8  ;;  %v6356_v6 = vsel %vm5953_vm5, %v4133_v57, %v1049_v50  ;;  %v6360_v8 = vsel %vm5953_vm5, %v4134_v63, %v1053_v54  ;;  %v4506_v13 = vcombine.high %v6352_v2, %v6300_v7  ;;  %v5254_v50 = vld [vmem:[%s6972_s1 + $0x340] ss:$8 sps:$4 sm:$0xff]  }
  0xb6   : > { %2778 = vmatprep.subr.bf16.mxu0 %v5206_v9  ;;  %v5238_v9 = vld [vmem:[%s6972_s1 + $0x314] ss:$8 sps:$4 sm:$0xff]   ;;  %v4174_v10 = vcombine.high %v6356_v6, %v6360_v8  ;;  %v4173_v11 = vcombine.low %v6356_v6, %v6360_v8 }
  0xb7   : > { %v4632_v8 = vld [vmem:[%s5623_s29 + $0x30] sm:$0xee] }
  0xb8   : > { %1305 = vmatpush1.bf16.msra.mxu1 %v5201_v12  ;;  %v5241_v12 = vld [vmem:[%s6972_s1 + $0x714] ss:$8 sps:$4 sm:$0xff]  }
  0xb9   : > { %2779 = vmatpush1.bf16.msra.mxu0 %v5204_v56  ;;  %1306 = vmatprep.subr.bf16.mxu1 %v5210_v21  ;;  %v4505_v56 = vcombine.low %v6352_v2, %v6300_v7  ;;  %v2874_v21 = vshrl.u32 %v6384_v18, 16 }
  0xba   : > { %2780 = vmatprep.subr.bf16.mxu0 %v5213_v19  ;;  %v5242_v19 = vld [vmem:[%s6972_s1 + $0x320] ss:$8 sps:$4 sm:$0xff]  }
  0xbb   : > { %v2876_v35 = vrot.slane %v2874_v21, 4  ;;  %v3315_v21 = vrot.slane %v6428_v38, 5 }
  0xbc   : > { %1307 = vmatpush1.bf16.msra.mxu1 %v5208_v24  ;;  %v5245_v24 = vld [vmem:[%s6972_s1 + $0x720] ss:$8 sps:$4 sm:$0xff]  }
  0xbd   : > { %2781 = vmatpush1.bf16.msra.mxu0 %v5211_v25  ;;  %1308 = vmatprep.subr.bf16.mxu1 %v5217_v28  ;;  %v5250_v25 = vld [vmem:[%s6972_s1 + $0x334] ss:$8 sps:$4 sm:$0xff]   ;;  %v5248_v28 = vld [vmem:[%s6972_s1 + $0x330] ss:$8 sps:$4 sm:$0xff]  }
  0xbe   : > { %2782 = vmatprep.subr.bf16.mxu0 %v5220_v3  ;;  %v2865_v3 = vrot.slane %v2863_v52, 5  ;;  %v6514_v52 = vld [vmem:[%s5623_s29 + $0x48] sm:$0x11] }
  0xc0   : > { %1309 = vmatpush1.bf16.msra.mxu1 %v5215_v36  ;;  %v2879_v36 = vrot.slane %v2877_v22, 5  ;;  %v5280_v22 = vld [vmem:[%s6972_s1 + $0x384] ss:$8 sps:$4 sm:$0xff]  }
  0xc1   : > { %2783 = vmatpush1.bf16.msra.mxu0 %v5218_v44  ;;  %1310 = vmatprep.subr.bf16.mxu1 %v5224_v45  ;;  %v5256_v44 = vld [vmem:[%s6972_s1 + $0x344] ss:$8 sps:$4 sm:$0xff]   ;;  %v6442_v45 = vld [vmem:[%s5623_s29 + $0x90] sm:$0xff] }
  0xc2   : > { %2784 = vmatprep.subr.bf16.mxu0 %v5227_v49  ;;  %v2869_v49 = vshll.u32 %v6425_v37, 16  ;;  %v4510_v54 = vcombine.high %v6339_v0, %v6442_v45 }
  0xc4   : > { %1311 = vmatpush1.bf16.msra.mxu1 %v5222_v46  ;;  %v2880_v46 = vor.u32 %v2879_v36, %v2876_v35  ;;  %v2871_v4 = vrot.slane %v2869_v49, 5  ;;  %v5278_v35 = vld [vmem:[%s6972_s1 + $0x380] ss:$8 sps:$4 sm:$0xff]  }
  0xc5   : > { %2785 = vmatpush1.bf16.msra.mxu0 %v5225_v47  ;;  %1611 = vmatprep.subr.bf16.mxu1 %v5230_v51  ;;  %v2883_v47 = vshll.u32 %v6428_v38, 16  ;;  %v5262_v51 = vld [vmem:[%s6972_s1 + $0x354] ss:$8 sps:$4 sm:$0xff]   ;;  %v5281_v36 = vld [vmem:[%s6972_s1 + $0x780] ss:$8 sps:$4 sm:$0xff]  }
  0xc6   : > { %3196 = vmatprep.subr.bf16.mxu0 %v5235_v53  ;;  %v5265_v53 = vld [vmem:[%s6972_s1 + $0x754] ss:$8 sps:$4 sm:$0xff]   ;;  %v2881_v57 = vrot.slane %v2880_v46, 4 }
  0xc7   : > { %1313 = vmatmul.mubr.bf16.vlgmr.msra.gmra.mrb[0].mxu1 %v4167_v39  ;;  %v2860_v39 = vshrl.u32 %v6173_v42, 16  ;;  %v2885_v63 = vrot.slane %v2883_v47, 5  ;;  %v4634_v38 = vld [vmem:[%s5623_s29 + $0x50] sm:$0xee] }
  0xc8   : > { %2787 = vmatmul.mubr.bf16.vlgmr.msra.gmra.mrb[0].mxu0 %v4503_v61  ;;  %1612 = vmatpush1.bf16.msra.mxu1 %v5228_v59  ;;  %v5260_v59 = vld [vmem:[%s6972_s1 + $0x350] ss:$8 sps:$4 sm:$0xff]   ;;  %v4642_v46 = vrot.slane %v4634_v38, 9  ;;  %v2891_v38 = vshll.u32 %v6352_v2, 16 }
  0xc9   : > { %3197 = vmatpush1.bf16.msra.mxu0 %v5233_v1  ;;  %1613 = vmatprep.subr.bf16.mxu1 %v5238_v9  ;;  %v2862_v32 = vrot.slane %v2860_v39, 4  ;;  %v6481_v61 = vld [vmem:[%s5623_s29 + $0x10] sm:$0xff]  ;;  %v6489_v9 = vsel %vm5684_vm2, %v2881_v57, %v2885_v63  ;;  %v6576_v57 = vld [vmem:[%s5623_s29 + $0x98] sm:$0x11] }
  0xca   : > { %3198 = vmatprep.subr.bf16.mxu0 %v5241_v12  ;;  %1322 = vmatprep.mubr.bf16.mxu1 %v4170_v26  ;;  %v5253_v26 = vld [vmem:[%s6972_s1 + $0x734] ss:$8 sps:$4 sm:$0xff]   ;;  %v5269_v12 = vld [vmem:[%s6972_s1 + $0x760] ss:$8 sps:$4 sm:$0xff]  }
  0xcb   : > { %2796 = vmatprep.mubr.bf16.mxu0 %v4506_v13  ;;  %v2866_v23 = vor.u32 %v2865_v3, %v2862_v32  ;;  %v5274_v13 = vld [vmem:[%s6972_s1 + $0x374] ss:$8 sps:$4 sm:$0xff]   ;;  %v4633_v3 = vld [vmem:[%s5623_s29 + $0x40] sm:$0xee] }
  0xcc   : > { %1614 = vmatpush1.bf16.msra.mxu1 %v5236_v16  ;;  %v5277_v16 = vld [vmem:[%s6972_s1 + $0x774] ss:$8 sps:$4 sm:$0xff]  }
  0xcd   : > { %3199 = vmatpush1.bf16.msra.mxu0 %v5239_v17  ;;  %1615 = vmatprep.subr.bf16.mxu1 %v5244_v14  ;;  %v2867_v55 = vrot.slane %v2866_v23, 4  ;;  %v5272_v17 = vld [vmem:[%s6972_s1 + $0x370] ss:$8 sps:$4 sm:$0xff]   ;;  %v5286_v23 = vld [vmem:[%s6972_s1 + $0x394] ss:$8 sps:$4 sm:$0xff]  }
  0xce   : > { %3200 = vmatprep.subr.bf16.mxu0 %v5247_v48  ;;  %v5275_v14 = vld [vmem:[%s6972_s1 + $0x770] ss:$8 sps:$4 sm:$0xff]   ;;  %v4248_v48 = vcombine.high %v6481_v61, %v6173_v42 }
  0xcf   : > { %1323 = vmatmul.mubr.bf16.gmra.mrb[4].mxu1 %v4169_v27  ;;  %v4507_v27 = vcombine.low %v6315_v30, %v6336_v33  ;;  %v6485_v1 = vsel %vm5684_vm2, %v2867_v55, %v2871_v4  ;;  %v4636_v47 = vld [vmem:[%s5623_s29 + $0x70] sm:$0xee] }
  0xd0   : > { %2797 = vmatmul.mubr.bf16.gmra.mrb[4].mxu0 %v4505_v56  ;;  %1616 = vmatpush1.bf16.msra.mxu1 %v5242_v19  ;;  %v4592_v39 = vcombine.high %v6485_v1, %v6489_v9  ;;  %v3311_v56 = vrot.slane %v6425_v37, 5  ;;  %v5283_v19 = vld [vmem:[%s6972_s1 + $0x784] ss:$8 sps:$4 sm:$0xff]   ;;  %v4640_v37 = vrot.slane %v4632_v8, 9  ;;  %v4644_v55 = vrot.slane %v4636_v47, 9 }
  0xd1   : > { %3201 = vmatpush1.bf16.msra.mxu0 %v5245_v24  ;;  %1617 = vmatprep.subr.bf16.mxu1 %v5250_v25  ;;  %v6528_v24 = vld [vmem:[%s5623_s29 + $0x58] sm:$0x11]  ;;  %v6531_v25 = vld [vmem:[%s5623_s29 + $0x68] sm:$0x11]  ;;  %v4638_v4 = vld [vmem:[%s5623_s29 + $0x90] sm:$0xee] }
  0xd2   : > { %3202 = vmatprep.subr.bf16.mxu0 %v5253_v26  ;;  %1332 = vmatprep.mubr.bf16.mxu1 %v4172_v43  ;;  %v5257_v43 = vld [vmem:[%s6972_s1 + $0x740] ss:$8 sps:$4 sm:$0xff]   ;;  %v3319_v26 = vrot.slane %v6514_v52, 5  ;;  %v3323_v32 = vrot.slane %v6528_v24, 5  ;;  %v3327_v6 = vrot.slane %v6531_v25, 5 }
  0xd3   : > { %2806 = vmatprep.mubr.bf16.mxu0 %v4508_v29  ;;  %v4631_v29 = vld [vmem:[%s5623_s29 + $0x20] sm:$0xee]  ;;  %v5303_v8 = vld [vmem:[%s6972_s1 + $0x7b4] ss:$8 sps:$4 sm:$0xff]  }
  0xd4   : > { %1618 = vmatpush1.bf16.msra.mxu1 %v5248_v28  ;;  %v6535_v28 = vld [vmem:[%s5623_s29 + $0x78] sm:$0x11] }
  0xd5   : > { %3203 = vmatpush1.bf16.msra.mxu0 %v5251_v5  ;;  %1619 = vmatprep.subr.bf16.mxu1 %v5256_v44  ;;  %v3331_v5 = vrot.slane %v6535_v28, 5  ;;  %v4641_v44 = vrot.slane %v4633_v3, 9  ;;  %v5317_v47 = vld [vmem:[%s6972_s1 + $0x7d4] ss:$8 sps:$4 sm:$0xff]  }
  0xd6   : > { %3204 = vmatprep.subr.bf16.mxu0 %v5259_v41  ;;  %v4635_v41 = vld [vmem:[%s5623_s29 + $0x60] sm:$0xee] }
  0xd7   : > { %1333 = vmatmul.mubr.bf16.gmra.mrb[8].mxu1 %v4171_v58  ;;  %v4509_v58 = vcombine.low %v6339_v0, %v6442_v45 }
  0xd8   : > { %2807 = vmatmul.mubr.bf16.gmra.mrb[8].mxu0 %v4507_v27  ;;  %1620 = vmatpush1.bf16.msra.mxu1 %v5254_v50  ;;  %v5289_v27 = vld [vmem:[%s6972_s1 + $0x794] ss:$8 sps:$4 sm:$0xff]   ;;  %v4637_v50 = vld [vmem:[%s5623_s29 + $0x80] sm:$0xee] }
  0xd9   : > { %3205 = vmatpush1.bf16.msra.mxu0 %v5257_v43  ;;  %1621 = vmatprep.subr.bf16.mxu1 %v5262_v51  ;;  %v6564_v43 = vld [vmem:[%s5623_s29 + $0x88] sm:$0x11]  ;;  %v6568_v51 = vsel %vm5953_vm5, %v4640_v37, %v3315_v21  ;;  %v4646_v21 = vrot.slane %v4638_v4, 9  ;;  %v2888_v37 = vshrl.u32 %v6352_v2, 16 }
  0xda   : > { %3206 = vmatprep.subr.bf16.mxu0 %v5265_v53  ;;  %1342 = vmatprep.mubr.bf16.mxu1 %v4174_v10  ;;  %v5266_v10 = vld [vmem:[%s6972_s1 + $0x360] ss:$8 sps:$4 sm:$0xff]   ;;  %v6572_v53 = vsel %vm5953_vm5, %v4641_v44, %v3319_v26  ;;  %v2902_v44 = vshrl.u32 %v6300_v7, 16 }
  0xdb   : > { %2816 = vmatprep.mubr.bf16.mxu0 %v4510_v54  ;;  %v4643_v54 = vrot.slane %v4635_v41, 9  ;;  %v5290_v26 = vld [vmem:[%s6972_s1 + $0x3a0] ss:$8 sps:$4 sm:$0xff]   ;;  %v2905_v41 = vshll.u32 %v6300_v7, 16 }
  0xdc   : > { %1622 = vmatpush1.bf16.msra.mxu1 %v5260_v59 }
  0xdd   : > { %3207 = vmatpush1.bf16.msra.mxu0 %v5263_v60  ;;  %1623 = vmatprep.subr.bf16.mxu1 %v5268_v20  ;;  %v6584_v60 = vsel %vm5953_vm5, %v4642_v46, %v3323_v32  ;;  %v4645_v20 = vrot.slane %v4637_v50, 9  ;;  %v5314_v46 = vld [vmem:[%s6972_s1 + $0x3d4] ss:$8 sps:$4 sm:$0xff]   ;;  %v2890_v50 = vrot.slane %v2888_v37, 4  ;;  %v2907_v4 = vrot.slane %v2905_v41, 5 }
  0xde   : > { %3208 = vmatprep.subr.bf16.mxu0 %v5271_v40  ;;  %v5284_v40 = vld [vmem:[%s6972_s1 + $0x390] ss:$8 sps:$4 sm:$0xff]  }
  0xdf   : > { %1343 = vmatmul.mubr.bf16.gmra.mrb[12].mxu1 %v4173_v11  ;;  %v4639_v11 = vrot.slane %v4631_v29, 9  ;;  %v5294_v29 = vld [vmem:[%s6972_s1 + $0x7a0] ss:$8 sps:$4 sm:$0xff]  }
  0xe0   : > { %2817 = vmatmul.mubr.bf16.gmra.mrb[12].mxu0 %v4509_v58  ;;  %1624 = vmatpush1.bf16.msra.mxu1 %v5266_v10  ;;  %v5287_v58 = vld [vmem:[%s6972_s1 + $0x790] ss:$8 sps:$4 sm:$0xff]   ;;  %v4682_v10 = vcombine.high %v6572_v53, %v6584_v60 }
  0xe1   : > { %3209 = vmatpush1.bf16.msra.mxu0 %v5269_v12  ;;  %1625 = vmatprep.subr.bf16.mxu1 %v5274_v13  ;;  %v6559_v49 = vsel %vm5953_vm5, %v4639_v11, %v3311_v56  ;;  %v4681_v12 = vcombine.low %v6572_v53, %v6584_v60  ;;  %v6598_v13 = vsel %vm5953_vm5, %v4643_v54, %v3327_v6  ;;  %v3335_v56 = vrot.slane %v6564_v43, 5  ;;  %v5300_v6 = vld [vmem:[%s6972_s1 + $0x3b4] ss:$8 sps:$4 sm:$0xff]   ;;  %v5390_v53 = vld [vmem:[%s6974_s3 + $0x48] sm:$0xff]  }
  0xe2   : > { %3210 = vmatprep.subr.bf16.mxu0 %v5277_v16  ;;  %1643 = vmatprep.mubr.bf16.mxu1 %v4248_v48  ;;  %v4679_v63 = vcombine.low %v6559_v49, %v6568_v51  ;;  %v4680_v59 = vcombine.high %v6559_v49, %v6568_v51  ;;  %v6602_v16 = vsel %vm5953_vm5, %v4644_v55, %v3331_v5  ;;  %v5301_v5 = vld [vmem:[%s6972_s1 + $0x7b0] ss:$8 sps:$4 sm:$0xff]   ;;  %v2893_v54 = vrot.slane %v2891_v38, 5  ;;  %v5388_v49 = vld [vmem:[%s6974_s3 + $0x40] sm:$0xff]  }
  0xe3   : > { %3228 = vmatprep.mubr.bf16.mxu0 %v4592_v39  ;;  %v4684_v48 = vcombine.high %v6598_v13, %v6602_v16  ;;  %v4683_v39 = vcombine.low %v6598_v13, %v6602_v16  ;;  %v2904_v55 = vrot.slane %v2902_v44, 4  ;;  %v5389_v51 = vld [vmem:[%s6974_s3] sm:$0xff]   ;;  %v5392_v60 = vld [vmem:[%s6974_s3 + $0x50] sm:$0xff]   ;;  %v5395_v13 = vld [vmem:[%s6974_s3 + $0x18] sm:$0xff]  }
  0xe4   : > { %1626 = vmatpush1.bf16.msra.mxu1 %v5272_v17  ;;  %v5292_v17 = vld [vmem:[%s6972_s1 + $0x3a4] ss:$8 sps:$4 sm:$0xff]  }
  0xe5   : > { %3211 = vmatpush1.bf16.msra.mxu0 %v5275_v14  ;;  %1627 = vmatprep.subr.bf16.mxu1 %v5280_v22  ;;  %v5296_v14 = vld [vmem:[%s6972_s1 + $0x7a4] ss:$8 sps:$4 sm:$0xff]   ;;  %v3339_v22 = vrot.slane %v6576_v57, 5 }
  0xe6   : > { %3212 = vmatprep.subr.bf16.mxu0 %v5283_v19  ;;  %v6618_v19 = vsel %vm5953_vm5, %v4645_v20, %v3335_v56  ;;  %v5312_v20 = vld [vmem:[%s6972_s1 + $0x3d0] ss:$8 sps:$4 sm:$0xff]   ;;  %v5324_v56 = vld [vmem:[%s6972_s1 + $0x7e4] ss:$8 sps:$4 sm:$0xff]  }
  0xe7   : > { %v6628_v32 = vsel %vm5953_vm5, %v4646_v21, %v3339_v22  ;;  %v2930_v21 = vshrl.u32 %v6336_v33, 16  ;;  %v2933_v22 = vshll.u32 %v6336_v33, 16  ;;  %v5396_v16 = vld [vmem:[%s6974_s3 + $0x60] sm:$0xff]  }
  0xe8   : > { %1628 = vmatpush1.bf16.msra.mxu1 %v5278_v35  ;;  %v4686_v11 = vcombine.high %v6618_v19, %v6628_v32  ;;  %v4685_v3 = vcombine.low %v6618_v19, %v6628_v32  ;;  %v5306_v35 = vld [vmem:[%s6972_s1 + $0x3c4] ss:$8 sps:$4 sm:$0xff]   ;;  %v5400_v32 = vld [vmem:[%s6974_s3 + $0x70] sm:$0xff]  }
  0xe9   : > { %3213 = vmatpush1.bf16.msra.mxu0 %v5281_v36  ;;  %1629 = vmatprep.subr.bf16.mxu1 %v5286_v23  ;;  %v5310_v36 = vld [vmem:[%s6972_s1 + $0x7c4] ss:$8 sps:$4 sm:$0xff]   ;;  %v5304_v23 = vld [vmem:[%s6972_s1 + $0x3c0] ss:$8 sps:$4 sm:$0xff]   ;;  %v2932_v37 = vrot.slane %v2930_v21, 4  ;;  %v2935_v38 = vrot.slane %v2933_v22, 5  ;;  %v4247_v22 = vcombine.low %v6481_v61, %v6173_v42 }
  0xea   : > { %3214 = vmatprep.subr.bf16.mxu0 %v5289_v27  ;;  %v5308_v27 = vld [vmem:[%s6972_s1 + $0x7c0] ss:$8 sps:$4 sm:$0xff]   ;;  %v2939_v21 = vshll.u32 %v6535_v28, 16 }
  0xeb   : > { %v5399_v19 = vld [vmem:[%s6974_s3 + $0x28] sm:$0xff]  }
  0xec   : > { %1630 = vmatpush1.bf16.msra.mxu1 %v5284_v40  ;;  %v5315_v40 = vld [vmem:[%s6972_s1 + $0x7d0] ss:$8 sps:$4 sm:$0xff]  }
  0xed   : > { %3215 = vmatpush1.bf16.msra.mxu0 %v5287_v58  ;;  %1631 = vmatprep.subr.bf16.mxu1 %v5292_v17  ;;  %v2916_v58 = vshrl.u32 %v6315_v30, 16  ;;  %v2919_v17 = vshll.u32 %v6315_v30, 16 }
  0xee   : > { %3216 = vmatprep.subr.bf16.mxu0 %v5296_v14  ;;  %v5320_v14 = vld [vmem:[%s6972_s1 + $0x3e4] ss:$8 sps:$4 sm:$0xff]  }
  0xf0   : > { %1632 = vmatpush1.bf16.msra.mxu1 %v5290_v26  ;;  %v2894_v26 = vor.u32 %v2893_v54, %v2890_v50  ;;  %v2944_v54 = vshrl.u32 %v6339_v0, 16 }
  0xf1   : > { %3217 = vmatpush1.bf16.msra.mxu0 %v5294_v29  ;;  %1633 = vmatprep.subr.bf16.mxu1 %v5300_v6  ;;  %v2897_v29 = vshll.u32 %v6514_v52, 16  ;;  %v2908_v6 = vor.u32 %v2907_v4, %v2904_v55  ;;  %v5328_v52 = vld [vmem:[%s6972_s1 + $0x3f4] ss:$8 sps:$4 sm:$0xff]   ;;  %v5336_v55 = vld [vmem:[%s6972_s1 + $0x804] ss:$8 sps:$4 sm:$0xff]   ;;  %v2936_v4 = vor.u32 %v2935_v38, %v2932_v37 }
  0xf2   : > { %3218 = vmatprep.subr.bf16.mxu0 %v5303_v8  ;;  %v2911_v8 = vshll.u32 %v6528_v24, 16  ;;  %v5331_v24 = vld [vmem:[%s6972_s1 + $0x7f4] ss:$8 sps:$4 sm:$0xff]   ;;  %v2895_v44 = vrot.slane %v2894_v26, 4  ;;  %v4591_v26 = vcombine.low %v6485_v1, %v6489_v9 }
  0xf3   : > { %v2899_v41 = vrot.slane %v2897_v29, 5  ;;  %v4250_v29 = vcombine.high %v6384_v18, %v6352_v2 }
  0xf4   : > { %1634 = vmatpush1.bf16.msra.mxu1 %v5298_v31  ;;  %v5318_v31 = vld [vmem:[%s6972_s1 + $0x3e0] ss:$8 sps:$4 sm:$0xff]  }
  0xf5   : > { %3219 = vmatpush1.bf16.msra.mxu0 %v5301_v5  ;;  %1635 = vmatprep.subr.bf16.mxu1 %v5306_v35  ;;  %v5322_v5 = vld [vmem:[%s6972_s1 + $0x7e0] ss:$8 sps:$4 sm:$0xff]   ;;  %v2918_v35 = vrot.slane %v2916_v58, 4  ;;  %v2961_v58 = vshll.u32 %v6442_v45, 16 }
  0xf6   : > { %3220 = vmatprep.subr.bf16.mxu0 %v5310_v36  ;;  %v2921_v36 = vrot.slane %v2919_v17, 5  ;;  %v2900_v17 = vsel %vm5684_vm2, %v2895_v44, %v2899_v41  ;;  %v2953_v44 = vshll.u32 %v6564_v43, 16  ;;  %v2967_v41 = vshll.u32 %v6576_v57, 16 }
  0xf8   : > { %1636 = vmatpush1.bf16.msra.mxu1 %v5304_v23  ;;  %v2909_v23 = vrot.slane %v2908_v6, 4  ;;  %v2922_v50 = vor.u32 %v2921_v36, %v2918_v35  ;;  %v2946_v6 = vrot.slane %v2944_v54, 4  ;;  %v5337_v35 = vld [vmem:[%s6972_s1 + $0x810] ss:$8 sps:$4 sm:$0xff]   ;;  %v5344_v36 = vld [vmem:[%s6972_s1 + $0x824] ss:$8 sps:$4 sm:$0xff]  }
  0xf9   : > { %3221 = vmatpush1.bf16.msra.mxu0 %v5308_v27  ;;  %1637 = vmatprep.subr.bf16.mxu1 %v5314_v46  ;;  %v2913_v27 = vrot.slane %v2911_v8, 5  ;;  %v5326_v46 = vld [vmem:[%s6972_s1 + $0x3f0] ss:$8 sps:$4 sm:$0xff]   ;;  %v2963_v8 = vrot.slane %v2961_v58, 5  ;;  %v2955_v57 = vrot.slane %v2953_v44, 5 }
  0xfa   : > { %3222 = vmatprep.subr.bf16.mxu0 %v5317_v47  ;;  %v5329_v47 = vld [vmem:[%s6972_s1 + $0x7f0] ss:$8 sps:$4 sm:$0xff]   ;;  %v2923_v1 = vrot.slane %v2922_v50, 4  ;;  %v5347_v50 = vld [vmem:[%s6972_s1 + $0x834] ss:$8 sps:$4 sm:$0xff]  }
  0xfc   : > { %1638 = vmatpush1.bf16.msra.mxu1 %v5312_v20  ;;  %v2947_v20 = vshll.u32 %v6339_v0, 16 }
  0xfd   : > { %3223 = vmatpush1.bf16.msra.mxu0 %v5315_v40  ;;  %1639 = vmatprep.subr.bf16.mxu1 %v5320_v14  ;;  %v2958_v40 = vshrl.u32 %v6442_v45, 16  ;;  %v2914_v14 = vsel %vm5684_vm2, %v2909_v23, %v2913_v27  ;;  %v5334_v45 = vld [vmem:[%s6972_s1 + $0x800] ss:$8 sps:$4 sm:$0xff]   ;;  %v4249_v23 = vcombine.low %v6384_v18, %v6352_v2  ;;  %v5345_v2 = vld [vmem:[%s6972_s1 + $0x830] ss:$8 sps:$4 sm:$0xff]  }
  0xfe   : > { %3224 = vmatprep.subr.bf16.mxu0 %v5324_v56  ;;  %v2925_v56 = vshll.u32 %v6531_v25, 16  ;;  %v5339_v25 = vld [vmem:[%s6972_s1 + $0x814] ss:$8 sps:$4 sm:$0xff]   ;;  %v4594_v28 = vcombine.high %v2900_v17, %v2914_v14  ;;  %v2949_v42 = vrot.slane %v2947_v20, 5  ;;  %v4593_v27 = vcombine.low %v2900_v17, %v2914_v14  ;;  %v5352_v18 = vld [vmem:[%s6972_s1 + $0x844] ss:$8 sps:$4 sm:$0xff]  }
  0xff   : > { %v2960_v61 = vrot.slane %v2958_v40, 4  ;;  %v5350_v17 = vld [vmem:[%s6972_s1 + $0x840] ss:$8 sps:$4 sm:$0xff]   ;;  %v4254_v14 = vcombine.high %v6336_v33, %v6339_v0  ;;  %v5369_v0 = vld [vmem:[%s6972_s1 + $0x894] ss:$8 sps:$4 sm:$0xff]  }
 0x100   : > { %1640 = vmatpush1.bf16.msra.mxu1 %v5318_v31  ;;  %v2927_v9 = vrot.slane %v2925_v56, 5  ;;  %v2937_v31 = vrot.slane %v2936_v4, 4  ;;  %v2969_v4 = vrot.slane %v2967_v41, 5  ;;  %v5355_v56 = vld [vmem:[%s6972_s1 + $0x854] ss:$8 sps:$4 sm:$0xff]  }
 0x101   : > { %3225 = vmatpush1.bf16.msra.mxu0 %v5322_v5  ;;  %1641 = vmatprep.subr.bf16.mxu1 %v5328_v52  ;;  %v2941_v5 = vrot.slane %v2939_v21, 5  ;;  %v2950_v52 = vor.u32 %v2949_v42, %v2946_v6  ;;  %v5364_v33 = vld [vmem:[%s6972_s1 + $0x880] ss:$8 sps:$4 sm:$0xff]   ;;  %v5375_v6 = vld [vmem:[%s6972_s1 + $0x8b4] ss:$8 sps:$4 sm:$0xff]  }
 0x102   : > { %3226 = vmatprep.subr.bf16.mxu0 %v5331_v24  ;;  %v2964_v24 = vor.u32 %v2963_v8, %v2960_v61  ;;  %v2928_v37 = vsel %vm5684_vm2, %v2923_v1, %v2927_v9  ;;  %v5376_v42 = vld [vmem:[%s6972_s1 + $0x8c0] ss:$8 sps:$4 sm:$0xff]   ;;  %v5381_v61 = vld [vmem:[%s6972_s1 + $0x8d4] ss:$8 sps:$4 sm:$0xff]   ;;  %v5379_v8 = vld [vmem:[%s6972_s1 + $0x8d0] ss:$8 sps:$4 sm:$0xff]  }
 0x103   : > { %v2942_v38 = vsel %vm5684_vm2, %v2937_v31, %v2941_v5  ;;  %v2951_v54 = vrot.slane %v2950_v52, 4  ;;  %v5384_v1 = vld [vmem:[%s6972_s1 + $0x8e4] ss:$8 sps:$4 sm:$0xff]   ;;  %v5382_v9 = vld [vmem:[%s6972_s1 + $0x8e0] ss:$8 sps:$4 sm:$0xff]  }
 0x104   : > { %1642 = vmatpush1.bf16.msra.mxu1 %v5326_v46  ;;  %v5342_v46 = vld [vmem:[%s6972_s1 + $0x820] ss:$8 sps:$4 sm:$0xff]   ;;  %v4596_v43 = vcombine.high %v2928_v37, %v2942_v38  ;;  %v4595_v58 = vcombine.low %v2928_v37, %v2942_v38  ;;  %v5387_v31 = vld [vmem:[%s6972_s1 + $0x8f4] ss:$8 sps:$4 sm:$0xff]   ;;  %v5385_v5 = vld [vmem:[%s6972_s1 + $0x8f0] ss:$8 sps:$4 sm:$0xff]  }
 0x105   : > { %3227 = vmatpush1.bf16.msra.mxu0 %v5329_v47  ;;  %v4252_v47 = vcombine.high %v6300_v7, %v6315_v30  ;;  %v2956_v20 = vsel %vm5684_vm2, %v2951_v54, %v2955_v57  ;;  %v5358_v7 = vld [vmem:[%s6972_s1 + $0x860] ss:$8 sps:$4 sm:$0xff]   ;;  %v5363_v30 = vld [vmem:[%s6972_s1 + $0x874] ss:$8 sps:$4 sm:$0xff]   ;;  %4739 = vmatprep.subr.bf16.mxu1 %v5388_v49 }
 0x106   : > { %3566 = vmatprep.subr.bf16.mxu0 %v5336_v55  ;;  %v2965_v55 = vrot.slane %v2964_v24, 4 }
 0x107   : > { %1644 = vmatmul.mubr.bf16.vlgmr.msra.gmra.mrb[0].mxu1 %v4247_v22  ;;  %v5360_v22 = vld [vmem:[%s6972_s1 + $0x864] ss:$8 sps:$4 sm:$0xff]  }
 0x108   : > { %3229 = vmatmul.mubr.bf16.vlgmr.msra.gmra.mrb[0].mxu0 %v4591_v26  ;;  %1653 = vmatprep.mubr.bf16.mxu1 %v4250_v29  ;;  %v2970_v40 = vsel %vm5684_vm2, %v2965_v55, %v2969_v4  ;;  %v5370_v29 = vld [vmem:[%s6972_s1 + $0x8a0] ss:$8 sps:$4 sm:$0xff]   ;;  %v3657_v4 = vlaneseq }
 0x109   : > { %3567 = vmatpush1.bf16.msra.mxu0 %v5334_v45  ;;  %3238 = vmatprep.mubr.bf16.mxu0 %v4594_v28  ;;  %v4598_v21 = vcombine.high %v2956_v20, %v2970_v40  ;;  %v4597_v26 = vcombine.low %v2956_v20, %v2970_v40  ;;  %v5366_v45 = vld [vmem:[%s6972_s1 + $0x884] ss:$8 sps:$4 sm:$0xff]   ;;  %v3655_v20 = vld [vmem:[%s6973_s2] sm:$0x3] }
 0x10a   : > { %3568 = vmatprep.subr.bf16.mxu0 %v5339_v25  ;;  %v5373_v25 = vld [vmem:[%s6972_s1 + $0x8b0] ss:$8 sps:$4 sm:$0xff]   ;;  %v5378_v28 = vld [vmem:[%s6972_s1 + $0x8c4] ss:$8 sps:$4 sm:$0xff]   ;;  %4740 = vmatpush3.bf16.msra.mxu1 %v5389_v51 }
 0x10b   : > { %4741 = vmatprep.subr.bf16.mxu1 %v5390_v53 }
 0x10d   : > { %3569 = vmatpush1.bf16.msra.mxu0 %v5337_v35  ;;  %v5403_v35 = vld [vmem:[%s6974_s3 + $0x38] sm:$0xff]  }
 0x10e   : > { %3570 = vmatprep.subr.bf16.mxu0 %v5344_v36 }
 0x10f   : > { %1654 = vmatmul.mubr.bf16.gmra.mrb[4].mxu1 %v4249_v23 }
 0x110   : > { %3239 = vmatmul.mubr.bf16.gmra.mrb[4].mxu0 %v4593_v27  ;;  %1663 = vmatprep.mubr.bf16.mxu1 %v4252_v47 }
 0x111   : > { %3571 = vmatpush1.bf16.msra.mxu0 %v5342_v46  ;;  %3248 = vmatprep.mubr.bf16.mxu0 %v4596_v43 }
 0x112   : > { %3572 = vmatprep.subr.bf16.mxu0 %v5347_v50 }
 0x115   : > { %3573 = vmatpush1.bf16.msra.mxu0 %v5345_v2  ;;  %v3658_v2 = vshrl.u32 %v3657_v4, 7 }
 0x116   : > { %3574 = vmatprep.subr.bf16.mxu0 %v5352_v18 }
 0x117   : > { %1664 = vmatmul.mubr.bf16.gmra.mrb[8].mxu1 %v4251_v62  ;;  %v5361_v62 = vld [vmem:[%s6972_s1 + $0x870] ss:$8 sps:$4 sm:$0xff]   ;;  %v3659_v18 = vsub.s32 0, %v3658_v2  ;;  %v3663_v40 = vsub.s32 1, %v3658_v2 }
 0x118   : > { %3249 = vmatmul.mubr.bf16.gmra.mrb[8].mxu0 %v4595_v58  ;;  %1673 = vmatprep.mubr.bf16.mxu1 %v4254_v14 }
 0x119   : > { %3575 = vmatpush1.bf16.msra.mxu0 %v5350_v17  ;;  %3258 = vmatprep.mubr.bf16.mxu0 %v4598_v21  ;;  %v6921_v58 = vrot.slane %v3655_v20, %v3659_v18  ;;  %v6923_v14 = vrot.slane %v3655_v20, %v3663_v40 }
 0x11a   : > { %3576 = vmatprep.subr.bf16.mxu0 %v5355_v56 }
 0x11d   : > { %3577 = vmatpush1.bf16.msra.mxu0 %v5353_v15 }
 0x11e   : > { %3578 = vmatprep.subr.bf16.mxu0 %v5360_v22 }
 0x11f   : > { %1674 = vmatmul.mubr.bf16.gmra.mrb[12].mxu1 %v4253_v34  ;;  %v5367_v34 = vld [vmem:[%s6972_s1 + $0x890] ss:$8 sps:$4 sm:$0xff]  }
 0x120   : > { %3259 = vmatmul.mubr.bf16.gmra.mrb[12].mxu0 %v4597_v26 }
 0x121   : > { %3579 = vmatpush1.bf16.msra.mxu0 %v5358_v7  ;;  %3598 = vmatprep.mubr.bf16.mxu0 %v4680_v59  ;;  %v5372_v59 = vld [vmem:[%s6972_s1 + $0x8a4] ss:$8 sps:$4 sm:$0xff]  }
 0x122   : > { %3580 = vmatprep.subr.bf16.mxu0 %v5363_v30 }
 0x125   : > { %3581 = vmatpush1.bf16.msra.mxu0 %v5361_v62 }
 0x126   : > { %3582 = vmatprep.subr.bf16.mxu0 %v5366_v45 }
 0x129   : > { %3583 = vmatpush1.bf16.msra.mxu0 %v5364_v33 }
 0x12a   : > { %3584 = vmatprep.subr.bf16.mxu0 %v5369_v0 }
 0x12d   : > { %3585 = vmatpush1.bf16.msra.mxu0 %v5367_v34 }
 0x12e   : > { %3586 = vmatprep.subr.bf16.mxu0 %v5372_v59 }
 0x131   : > { %3587 = vmatpush1.bf16.msra.mxu0 %v5370_v29 }
 0x132   : > { %3588 = vmatprep.subr.bf16.mxu0 %v5375_v6 }
 0x135   : > { %3589 = vmatpush1.bf16.msra.mxu0 %v5373_v25 }
 0x136   : > { %3590 = vmatprep.subr.bf16.mxu0 %v5378_v28 }
 0x139   : > { %3591 = vmatpush1.bf16.msra.mxu0 %v5376_v42 }
 0x13a   : > { %3592 = vmatprep.subr.bf16.mxu0 %v5381_v61 }
 0x13d   : > { %3593 = vmatpush1.bf16.msra.mxu0 %v5379_v8 }
 0x13e   : > { %3594 = vmatprep.subr.bf16.mxu0 %v5384_v1 }
 0x141   : > { %3595 = vmatpush1.bf16.msra.mxu0 %v5382_v9 }
 0x142   : > { %3596 = vmatprep.subr.bf16.mxu0 %v5387_v31 }
 0x145   : > { %3597 = vmatpush1.bf16.msra.mxu0 %v5385_v5 }
 0x148   : > { %3599 = vmatmul.mubr.bf16.vlgmr.msra.gmra.mrb[0].mxu0 %v4679_v63  ;;  %v5391_v63 = vld [vmem:[%s6974_s3 + $0x8] sm:$0xff]  }
 0x149   : > { %3608 = vmatprep.mubr.bf16.mxu0 %v4682_v10  ;;  %4742 = vmatpush3.bf16.msra.mxu1 %v5391_v63  ;;  %v5393_v10 = vld [vmem:[%s6974_s3 + $0x10] sm:$0xff]  }
 0x14a   : > { %4743 = vmatprep.subr.bf16.mxu1 %v5392_v60 }
 0x14d   : > { %4744 = vmatpush3.bf16.msra.mxu1 %v5393_v10 }
 0x150   : > { %3609 = vmatmul.mubr.bf16.gmra.mrb[4].mxu0 %v4681_v12  ;;  %v5394_v12 = vld [vmem:[%s6974_s3 + $0x58] sm:$0xff]  }
 0x151   : > { %3618 = vmatprep.mubr.bf16.mxu0 %v4684_v48  ;;  %4745 = vmatprep.subr.bf16.mxu1 %v5394_v12  ;;  %v5397_v48 = vld [vmem:[%s6974_s3 + $0x20] sm:$0xff]  }
 0x152   : > { %4746 = vmatpush3.bf16.msra.mxu1 %v5395_v13 }
 0x153   : > { %4747 = vmatprep.subr.bf16.mxu1 %v5396_v16 }
 0x156   : > { %4748 = vmatpush3.bf16.msra.mxu1 %v5397_v48 }
 0x158   : > { %3619 = vmatmul.mubr.bf16.gmra.mrb[8].mxu0 %v4683_v39  ;;  %v5398_v39 = vld [vmem:[%s6974_s3 + $0x68] sm:$0xff]  }
 0x159   : > { %3628 = vmatprep.mubr.bf16.mxu0 %v4686_v11  ;;  %4749 = vmatprep.subr.bf16.mxu1 %v5398_v39  ;;  %v5401_v11 = vld [vmem:[%s6974_s3 + $0x30] sm:$0xff]  }
 0x15a   : > { %4750 = vmatpush3.bf16.msra.mxu1 %v5399_v19 }
 0x15b   : > { %4751 = vmatprep.subr.bf16.mxu1 %v5400_v32 }
 0x15e   : > { %4752 = vmatpush3.bf16.msra.mxu1 %v5401_v11 }
 0x160   : > { %3629 = vmatmul.mubr.bf16.gmra.mrb[12].mxu0 %v4685_v3  ;;  %v5402_v3 = vld [vmem:[%s6974_s3 + $0x78] sm:$0xff]  }
 0x161   : > { %4753 = vmatprep.subr.bf16.mxu1 %v5402_v3 }
 0x162   : > { %4754 = vmatpush3.bf16.msra.mxu1 %v5403_v35 }
 0x1da   : > { %v1645_v36 = vpop.f32.mrb[0].mxu1 }
 0x1db   : > { %v1647_v52 = vpop.f32.mrb[1].mxu1 }
 0x1dc   : > { %v1649_v24 = vpop.f32.mrb[2].mxu1 }
 0x1dd   : > { %v1651_v37 = vpop.f32.mrb[3].mxu1 }
 0x1e2   : > { %v1655_v38 = vpop.f32.mrb[4].mxu1 }
 0x1e3   : > { %v1657_v44 = vpop.f32.mrb[5].mxu1 }
 0x1e4   : > { %v1659_v41 = vpop.f32.mrb[6].mxu1 }
 0x1e5   : > { %v1661_v23 = vpop.f32.mrb[7].mxu1 }
 0x1ea   : > { %v1665_v27 = vpop.f32.mrb[8].mxu1 }
 0x1eb   : > { %v1667_v46 = vpop.f32.mrb[9].mxu1 }
 0x1ec   : > { %v1669_v47 = vpop.f32.mrb[10].mxu1 }
 0x1ed   : > { %v1671_v50 = vpop.f32.mrb[11].mxu1 }
 0x1f2   : > { %v6910_v43 = vpop.f32.mrb[12].mxu1 }
 0x1f3   : > { %v6912_v54 = vpop.f32.mrb[13].mxu1 }
 0x1f4   : > { %v6914_v57 = vpop.f32.mrb[14].mxu1 }
 0x1f5   : > { %v6916_v55 = vpop.f32.mrb[15].mxu1 }
 0x21b   : > { %v3600_v17 = vpop.f32.mrb[0].mxu0 }
 0x21c   : > { %v4779_v56 = vadd.f32 %v3600_v17, %v1645_v36  ;;  %v3602_v21 = vpop.f32.mrb[1].mxu0 }
 0x21d   : > { %v4780_v15 = vadd.f32 %v3602_v21, %v1647_v52  ;;  %v3604_v22 = vpop.f32.mrb[2].mxu0 }
 0x21e   : > { %v3667_v26 = vadd.f32 %v4779_v56, %v6921_v58  ;;  %v4781_v7 = vadd.f32 %v3604_v22, %v1649_v24  ;;  %v3606_v30 = vpop.f32.mrb[3].mxu0 }
 0x21f   : > { %v3668_v62 = vadd.f32 %v4780_v15, %v6923_v14  ;;  %v4782_v45 = vadd.f32 %v3606_v30, %v1651_v37 }
 0x220   : > { %v3669_v33 = vadd.f32 %v4781_v7, %v6921_v58  ;;  %v3683_v34 = vmax.f32 %v3667_v26, 0.0 }
 0x221   : > { %v3670_v0 = vadd.f32 %v4782_v45, %v6923_v14  ;;  %v3684_v29 = vmax.f32 %v3668_v62, 0.0 }
 0x222   : > { %v3685_v59 = vmax.f32 %v3669_v33, 0.0 }
 0x223   : > { %v3686_v6 = vmax.f32 %v3670_v0, 0.0  ;;  %v3610_v25 = vpop.f32.mrb[4].mxu0 }
 0x224   : > { %v3699_v28 = vpack.c.bf16 %v3685_v59, %v3683_v34  ;;  %v4783_v42 = vadd.f32 %v3610_v25, %v1655_v38  ;;  %v3612_v61 = vpop.f32.mrb[5].mxu0 }
 0x225   : > { %v4784_v8 = vadd.f32 %v3612_v61, %v1657_v44  ;;  %v3614_v1 = vpop.f32.mrb[6].mxu0  ;;  %v3700_v9 = vpack.c.bf16 %v3686_v6, %v3684_v29 }
 0x226   : > { %v3671_v31 = vadd.f32 %v4783_v42, %v6921_v58  ;;  %v4785_v5 = vadd.f32 %v3614_v1, %v1659_v41  ;;  %v3616_v49 = vpop.f32.mrb[7].mxu0 }
 0x227   : > { %v3672_v51 = vadd.f32 %v4784_v8, %v6923_v14  ;;  %v4786_v53 = vadd.f32 %v3616_v49, %v1661_v23  ;;  %3874 = vmatprep.mubr.bf16.mxu1 %v3700_v9 }
 0x228   : > { %v3673_v63 = vadd.f32 %v4785_v5, %v6921_v58  ;;  %3875 = vmatmul.mubr.bf16.vlgmr.msra.gmra.mrb[16].mxu1 %v3699_v28  ;;  %v3687_v10 = vmax.f32 %v3671_v31, 0.0 }
 0x229   : > { %v3674_v60 = vadd.f32 %v4786_v53, %v6923_v14  ;;  %v3688_v13 = vmax.f32 %v3672_v51, 0.0 }
 0x22a   : > { %v3689_v12 = vmax.f32 %v3673_v63, 0.0 }
 0x22b   : > { %v3690_v16 = vmax.f32 %v3674_v60, 0.0  ;;  %v3620_v48 = vpop.f32.mrb[8].mxu0 }
 0x22c   : > { %v4787_v39 = vadd.f32 %v3620_v48, %v1665_v27  ;;  %v3622_v19 = vpop.f32.mrb[9].mxu0  ;;  %v3701_v32 = vpack.c.bf16 %v3689_v12, %v3687_v10 }
 0x22d   : > { %v4788_v11 = vadd.f32 %v3622_v19, %v1667_v46  ;;  %v3624_v3 = vpop.f32.mrb[10].mxu0  ;;  %v3702_v35 = vpack.c.bf16 %v3690_v16, %v3688_v13 }
 0x22e   : > { %v3675_v36 = vadd.f32 %v4787_v39, %v6921_v58  ;;  %v4789_v52 = vadd.f32 %v3624_v3, %v1669_v47  ;;  %v3626_v24 = vpop.f32.mrb[11].mxu0 }
 0x22f   : > { %v3676_v37 = vadd.f32 %v4788_v11, %v6923_v14  ;;  %v4790_v38 = vadd.f32 %v3626_v24, %v1671_v50  ;;  %3882 = vmatprep.mubr.bf16.mxu1 %v3702_v35 }
 0x230   : > { %v3677_v44 = vadd.f32 %v4789_v52, %v6921_v58  ;;  %3883 = vmatmul.mubr.bf16.gmra.mrb[20].mxu1 %v3701_v32  ;;  %v3691_v23 = vmax.f32 %v3675_v36, 0.0 }
 0x231   : > { %v3678_v41 = vadd.f32 %v4790_v38, %v6923_v14  ;;  %v3692_v4 = vmax.f32 %v3676_v37, 0.0 }
 0x232   : > { %v3693_v27 = vmax.f32 %v3677_v44, 0.0 }
 0x233   : > { %v3694_v2 = vmax.f32 %v3678_v41, 0.0  ;;  %v3630_v46 = vpop.f32.mrb[12].mxu0 }
 0x234   : > { %v4791_v18 = vadd.f32 %v3630_v46, %v6910_v43  ;;  %v3632_v20 = vpop.f32.mrb[13].mxu0  ;;  %v3703_v40 = vpack.c.bf16 %v3693_v27, %v3691_v23 }
 0x235   : > { %v4792_v47 = vadd.f32 %v3632_v20, %v6912_v54  ;;  %v3634_v17 = vpop.f32.mrb[14].mxu0  ;;  %v3704_v56 = vpack.c.bf16 %v3694_v2, %v3692_v4 }
 0x236   : > { %v3679_v50 = vadd.f32 %v4791_v18, %v6921_v58  ;;  %v4793_v21 = vadd.f32 %v3634_v17, %v6914_v57  ;;  %v3636_v15 = vpop.f32.mrb[15].mxu0 }
 0x237   : > { %v3680_v22 = vadd.f32 %v4792_v47, %v6923_v14  ;;  %v4794_v26 = vadd.f32 %v3636_v15, %v6916_v55  ;;  %3890 = vmatprep.mubr.bf16.mxu1 %v3704_v56  ;;  %v4719_v55 = vld [vmem:[%s6975_s4] ss:$0 sm:$0xff] }
 0x238   : > { %v3681_v7 = vadd.f32 %v4793_v21, %v6921_v58  ;;  %3891 = vmatmul.mubr.bf16.gmra.mrb[24].mxu1 %v3703_v40  ;;  %v3695_v30 = vmax.f32 %v3679_v50, 0.0 }
 0x239   : > { %v3682_v43 = vadd.f32 %v4794_v26, %v6923_v14  ;;  %v3696_v62 = vmax.f32 %v3680_v22, 0.0 }
 0x23a   : > { %v3697_v54 = vmax.f32 %v3681_v7, 0.0 }
 0x23b   : > { %v3698_v45 = vmax.f32 %v3682_v43, 0.0 }
 0x23c   : > { %v3705_v33 = vpack.c.bf16 %v3697_v54, %v3695_v30 }
 0x23d   : > { %v3706_v0 = vpack.c.bf16 %v3698_v45, %v3696_v62 }
 0x23f   : > { %3898 = vmatprep.mubr.bf16.mxu1 %v3706_v0 }
 0x240   : > { %3899 = vmatmul.mubr.bf16.gmra.mrb[28].mxu1 %v3705_v33 }
 0x2fb   : > { %v4755_v57 = vpop.f32.mrb[16].mxu1 }
 0x2fc   : > { %v4756_v34 = vpop.f32.mrb[17].mxu1 }
 0x2fd   : > { %v4757_v59 = vadd.f32 %v4756_v34, %v4755_v57  ;;  %v4758_v58 = vpop.f32.mrb[18].mxu1 }
 0x2fe   : > { %v4759_v14 = vpop.f32.mrb[19].mxu1 }
 0x2ff   : > { %v3877_v29 = vadd.f32 %v4757_v59, %v4719_v55  ;;  %v4760_v6 = vadd.f32 %v4759_v14, %v4758_v58 }
 0x301   : > { %3907 = vst [vmem:[%s6952_s28] sm:$0xff] %v3877_v29  ;;  %v3880_v25 = vadd.f32 %v4760_v6, %v4719_v55 }
 0x303   : > { %3908 = vst [vmem:[%s6952_s28 + $0x8] sm:$0xff] %v3880_v25  ;;  %v4761_v28 = vpop.f32.mrb[20].mxu1 }
 0x304   : > { %v4762_v42 = vpop.f32.mrb[21].mxu1 }
 0x305   : > { %v4763_v61 = vadd.f32 %v4762_v42, %v4761_v28  ;;  %v4764_v8 = vpop.f32.mrb[22].mxu1 }
 0x306   : > { %v4765_v1 = vpop.f32.mrb[23].mxu1 }
 0x307   : > { %v3885_v9 = vadd.f32 %v4763_v61, %v4719_v55  ;;  %v4766_v31 = vadd.f32 %v4765_v1, %v4764_v8 }
 0x309   : > { %3909 = vst [vmem:[%s6952_s28 + $0x10] sm:$0xff] %v3885_v9  ;;  %v3888_v5 = vadd.f32 %v4766_v31, %v4719_v55 }
 0x30b   : > { %3910 = vst [vmem:[%s6952_s28 + $0x18] sm:$0xff] %v3888_v5  ;;  %v4767_v49 = vpop.f32.mrb[24].mxu1 }
 0x30c   : > { %v4768_v51 = vpop.f32.mrb[25].mxu1 }
 0x30d   : > { %v4769_v53 = vadd.f32 %v4768_v51, %v4767_v49  ;;  %v4770_v63 = vpop.f32.mrb[26].mxu1 }
 0x30e   : > { %v4771_v60 = vpop.f32.mrb[27].mxu1 }
 0x30f   : > { %v3893_v10 = vadd.f32 %v4769_v53, %v4719_v55  ;;  %v4772_v12 = vadd.f32 %v4771_v60, %v4770_v63 }
 0x311   : > { %3911 = vst [vmem:[%s6952_s28 + $0x20] sm:$0xff] %v3893_v10  ;;  %v3896_v13 = vadd.f32 %v4772_v12, %v4719_v55 }
 0x313   : > { %3912 = vst [vmem:[%s6952_s28 + $0x28] sm:$0xff] %v3896_v13  ;;  %v4773_v16 = vpop.f32.mrb[28].mxu1 }
 0x314   : > { %v4774_v48 = vpop.f32.mrb[29].mxu1 }
 0x315   : > { %v4775_v39 = vadd.f32 %v4774_v48, %v4773_v16  ;;  %v4776_v19 = vpop.f32.mrb[30].mxu1 }
 0x316   : > { %v4777_v32 = vpop.f32.mrb[31].mxu1 }
 0x317   : > { %v3901_v11 = vadd.f32 %v4775_v39, %v4719_v55  ;;  %v4778_v3 = vadd.f32 %v4777_v32, %v4776_v19 }
 0x319   : > { %3913 = vst [vmem:[%s6952_s28 + $0x30] sm:$0xff] %v3901_v11  ;;  %v3904_v35 = vadd.f32 %v4778_v3, %v4719_v55 }
 0x31b   : > { %3914 = vst [vmem:[%s6952_s28 + $0x38] sm:$0xff] %v3904_v35 }
 0x31c PF: > { %s15_s20 = sadd.s32 1, %s5431_s20   ;;  %s6981_s18 = smov %s5427_s19 }
 0x31d   : > { %p12_p5 = scmp.ge.s32.totalorder %s15_s20, 4   ;;  %s6982_s19 = smov %s6984_s21 }
 0x31f   :  { %14 = sbr.rel (!%p12_p5) target bundleno = 2 (0x2), region = 80 }

</bundles_post_ra>
